<compile_context>
chip_gen: v7x
topology: tpu7x:2x2x1
jax: 0.10.0
libtpu: 0.0.40
codegen_flags: <defaults>
</compile_context>

<pallas_src>
import jax
import jax.numpy as jnp
from jax.experimental import pallas as pl
from jax.experimental.pallas import tpu as pltpu


def lstm_kernel(x_ref, wih_ref, whh_ref, b_ref, scale_ref, offset_ref,
                wlin_ref, blin_ref, out_ref):
    """Whole LSTM sequence + final Linear in one kernel (padded layouts).

    x_ref      : (T*BP, IP)     time-major input, batch padded to BP=8 rows/step
    wih_ref    : (IP, 4*HP)     input->gate weights, gate k at lanes [k*HP,(k+1)*HP)
    whh_ref    : (HP, 4*HP)     hidden->gate weights (padded contraction rows zero)
    b_ref      : (1, 4*HP)      combined bias (b_ih+b_hh), i/f/o pre-scaled by 0.5
    scale_ref  : (BP, 4*HP)     per-lane activation scale  (0.5/0.5/1.0/0.5)
    offset_ref : (BP, 4*HP)     per-lane activation offset (0.5/0.5/0.0/0.5)
    wlin_ref   : (HP, OP)       final linear weight (padded rows/cols zero)
    blin_ref   : (1, OP)        final linear bias (padded)
    out_ref    : (BP, OP)       linear(h_T), lane-dense full store
    Gate order along the 4*HP axis = PyTorch's (i, f, g, o).
    """
    BP = out_ref.shape[0]
    T = x_ref.shape[0] // BP
    HP = whh_ref.shape[0]

    # Hoisted input projection for ALL timesteps + bias: one MXU matmul, one
    # broadcast, entirely outside the serialized recurrence.
    pre = jnp.dot(x_ref[...], wih_ref[...],
                  preferred_element_type=jnp.float32) + b_ref[...]      # (T*BP, 4*HP)

    whh = whh_ref[...]            # (HP, 4*HP), independent of h -> off critical path
    scale = scale_ref[...]        # (BP, 4*HP) full-width, no in-loop broadcasts
    offset = offset_ref[...]      # (BP, 4*HP)

    h = jnp.zeros((BP, HP), jnp.float32)
    c = jnp.zeros((BP, HP), jnp.float32)

    # Static unroll (T small, known at trace time) -> full LLO scheduler visibility.
    for t in range(T):
        # Aligned 8-row slice + single fused recurrent matmul per step.
        z = pre[t * BP:(t + 1) * BP, :] + jnp.dot(
            h, whh, preferred_element_type=jnp.float32)                 # (BP, 4*HP)

        # One tanh (EUP) over the whole 4*HP axis, then one full-vreg mul+add:
        # i/f/o columns were pre-scaled by 0.5, so sigmoid(a) = 0.5*tanh(a/2)+0.5.
        act = jnp.tanh(z) * scale + offset
        i_g = act[:, 0 * HP:1 * HP]      # 128-lane-aligned slices: free vreg views
        f_g = act[:, 1 * HP:2 * HP]
        g_g = act[:, 2 * HP:3 * HP]
        o_g = act[:, 3 * HP:4 * HP]

        c = f_g * c + i_g * g_g
        h = o_g * jnp.tanh(c)

    # Final Linear; padded wlin rows/cols are zero so pad lanes contribute 0.
    out_ref[...] = (jnp.dot(h, wlin_ref[...],
                            preferred_element_type=jnp.float32) + blin_ref[...])


def lstm_forward(x, wih, whh, b, wlin, blin):
    """x: (B, T, I) -> (B, O). Matches torch: linear(lstm(x)[0][:, -1, :]).

    wih: (4, I, H), whh: (4, H, H), b: (4, 1, H) in PyTorch gate order (i, f, g, o),
    already transposed to (in, out); wlin: (H, O); blin: (1, O).
    """
    B, T, I = x.shape
    H = whh.shape[-1]
    O = wlin.shape[-1]

    HP = 128                       # per-gate lane width  -> one full lane tile
    BP = 8                         # padded batch         -> one f32 sublane tile
    IP = 8                         # padded input contraction dim
    OP = 128                       # padded output lane width (lane-dense store)

    f32 = jnp.float32
    gate_scale = jnp.array([0.5, 0.5, 1.0, 0.5], f32)    # pre-scale for tanh==sigmoid
    act_scale = jnp.array([0.5, 0.5, 1.0, 0.5], f32)
    act_offset = jnp.array([0.5, 0.5, 0.0, 0.5], f32)

    def pack_gates(w, in_dim, in_pad):
        # (4, in_dim, H) -> (in_pad, 4*HP); gate k occupies lanes [k*HP, k*HP+H),
        # all padding zero-filled so padded gate lanes stay inert (tanh(0)=0).
        wp = jnp.zeros((4, in_pad, HP), f32)
        wp = wp.at[:, :in_dim, :H].set(w.astype(f32) * gate_scale.reshape(4, 1, 1))
        return jnp.transpose(wp, (1, 0, 2)).reshape(in_pad, 4 * HP)

    wih_p = pack_gates(wih, I, IP)                                   # (IP, 4*HP)
    whh_p = pack_gates(whh, H, HP)                                   # (HP, 4*HP)

    b_p = jnp.zeros((4, 1, HP), f32).at[:, :, :H].set(
        b.astype(f32) * gate_scale.reshape(4, 1, 1))
    b_p = jnp.transpose(b_p, (1, 0, 2)).reshape(1, 4 * HP)           # (1, 4*HP)

    scale_p = jnp.broadcast_to(
        jnp.broadcast_to(act_scale.reshape(4, 1), (4, HP)).reshape(1, 4 * HP),
        (BP, 4 * HP))                                                # (BP, 4*HP)
    offset_p = jnp.broadcast_to(
        jnp.broadcast_to(act_offset.reshape(4, 1), (4, HP)).reshape(1, 4 * HP),
        (BP, 4 * HP))                                                # (BP, 4*HP)

    wlin_p = jnp.zeros((HP, OP), f32).at[:H, :O].set(wlin.astype(f32))
    blin_p = jnp.zeros((1, OP), f32).at[:, :O].set(blin.astype(f32))

    # Time-major, batch padded to 8 rows per timestep (padded rows zero) so every
    # per-step slice in the kernel is sublane-aligned and the hoisted projection
    # is one (T*BP, IP) @ (IP, 4*HP) matmul.
    x_tm = jnp.zeros((T, BP, IP), f32).at[:, :B, :I].set(
        jnp.transpose(x.astype(f32), (1, 0, 2)))
    x_tm = x_tm.reshape(T * BP, IP)

    vmem = pl.BlockSpec(memory_space=pltpu.MemorySpace.VMEM)
    out_pad = pl.pallas_call(
        lstm_kernel,
        out_shape=jax.ShapeDtypeStruct((BP, OP), f32),
        in_specs=[vmem] * 8,
        out_specs=vmem,
    )(x_tm, wih_p, whh_p, b_p, scale_p, offset_p, wlin_p, blin_p)
    return out_pad[:B, :O]


def reference(x, wih, whh, b, wlin, blin):
    """Pure-JAX reference of the same computation (standard LSTM formulation)."""
    x = jnp.transpose(x.astype(jnp.float32), (1, 0, 2))      # (T, B, I)
    B = x.shape[1]
    H = whh.shape[-1]

    def step(carry, x_t):
        h, c = carry

        def gate(k):
            return x_t @ wih[k] + h @ whh[k] + b[k]

        i = jax.nn.sigmoid(gate(0))
        f = jax.nn.sigmoid(gate(1))
        g = jnp.tanh(gate(2))
        o = jax.nn.sigmoid(gate(3))
        c = f * c + i * g
        h = o * jnp.tanh(c)
        return (h, c), None

    init = (jnp.zeros((B, H), jnp.float32), jnp.zeros((B, H), jnp.float32))
    (h_last, _), _ = jax.lax.scan(step, init, x)
    return h_last @ wlin + blin


if __name__ == "__main__":
    B, T, I, H, O = 2, 8, 6, 50, 3     # input_size=6, hidden_size=50, out=3 (from module)

    key = jax.random.PRNGKey(0)
    ks = jax.random.split(key, 8)
    scale = 1.0 / jnp.sqrt(jnp.float32(H))   # PyTorch default uniform(-1/sqrt(H), 1/sqrt(H))

    # Per-gate weights in PyTorch chunk order (i, f, g, o), pre-transposed to (in, out).
    wih = jax.random.uniform(ks[0], (4, I, H), jnp.float32, -scale, scale)
    whh = jax.random.uniform(ks[1], (4, H, H), jnp.float32, -scale, scale)
    b = (jax.random.uniform(ks[2], (4, 1, H), jnp.float32, -scale, scale)
         + jax.random.uniform(ks[3], (4, 1, H), jnp.float32, -scale, scale))  # b_ih + b_hh
    wlin = jax.random.uniform(ks[4], (H, O), jnp.float32, -scale, scale)
    blin = jax.random.uniform(ks[5], (1, O), jnp.float32, -scale, scale)

    x = jax.random.normal(ks[6], (B, T, I), jnp.float32)

    out = lstm_forward(x, wih, whh, b, wlin, blin)
    out = jax.block_until_ready(out)

    ref = reference(x, wih, whh, b, wlin, blin)
    assert out.shape == (B, O)
    assert jnp.allclose(out, ref, atol=2e-5, rtol=2e-5), (out, ref)

    print("KERNEL_OK")
</pallas_src>

<mosaic_0001>
module attributes {stable_mosaic.version = 11 : i64} {
  func.func @lstm_kernel(%arg0: memref<64x8xf32, #tpu.memory_space<vmem>>, %arg1: memref<8x512xf32, #tpu.memory_space<vmem>>, %arg2: memref<128x512xf32, #tpu.memory_space<vmem>>, %arg3: memref<1x512xf32, #tpu.memory_space<vmem>>, %arg4: memref<8x512xf32, #tpu.memory_space<vmem>>, %arg5: memref<8x512xf32, #tpu.memory_space<vmem>>, %arg6: memref<128x128xf32, #tpu.memory_space<vmem>>, %arg7: memref<1x128xf32, #tpu.memory_space<vmem>>, %arg8: memref<8x128xf32, #tpu.memory_space<vmem>>) attributes {dimension_semantics = [], scalar_prefetch = 0 : i64, scratch_operands = 0 : i64, tpu.core_type = #tpu.core_type<tc>} {
    %c0 = arith.constant 0 : index
    %c0_0 = arith.constant 0 : index
    %0 = vector.load %arg0[%c0, %c0_0] : memref<64x8xf32, #tpu.memory_space<vmem>>, vector<64x8xf32>
    %c0_1 = arith.constant 0 : index
    %c0_2 = arith.constant 0 : index
    %1 = vector.load %arg1[%c0_1, %c0_2] : memref<8x512xf32, #tpu.memory_space<vmem>>, vector<8x512xf32>
    %cst = arith.constant dense<0.000000e+00> : vector<64x512xf32>
    %2 = tpu.matmul %0, %1, %cst {dimension_numbers = #tpu.dot_dimension_numbers<[1], [0], [0], [1], [0, 0, 1, 1], [], []>} : vector<64x8xf32>, vector<8x512xf32>, vector<64x512xf32> -> vector<64x512xf32>
    %c0_3 = arith.constant 0 : index
    %c0_4 = arith.constant 0 : index
    %3 = vector.load %arg3[%c0_3, %c0_4] : memref<1x512xf32, #tpu.memory_space<vmem>>, vector<1x512xf32>
    %4 = vector.broadcast %3 : vector<1x512xf32> to vector<64x512xf32>
    %5 = arith.addf %2, %4 : vector<64x512xf32>
    %c0_5 = arith.constant 0 : index
    %c0_6 = arith.constant 0 : index
    %6 = vector.load %arg2[%c0_5, %c0_6] : memref<128x512xf32, #tpu.memory_space<vmem>>, vector<128x512xf32>
    %c0_7 = arith.constant 0 : index
    %c0_8 = arith.constant 0 : index
    %7 = vector.load %arg4[%c0_7, %c0_8] : memref<8x512xf32, #tpu.memory_space<vmem>>, vector<8x512xf32>
    %c0_9 = arith.constant 0 : index
    %c0_10 = arith.constant 0 : index
    %8 = vector.load %arg5[%c0_9, %c0_10] : memref<8x512xf32, #tpu.memory_space<vmem>>, vector<8x512xf32>
    %cst_11 = arith.constant 0.000000e+00 : f32
    %9 = vector.broadcast %cst_11 : f32 to vector<8x128xf32>
    %cst_12 = arith.constant 0.000000e+00 : f32
    %10 = vector.broadcast %cst_12 : f32 to vector<8x128xf32>
    %11 = vector.extract_strided_slice %5 {offsets = [0, 0], sizes = [8, 512], strides = [1, 1]} : vector<64x512xf32> to vector<8x512xf32>
    %cst_13 = arith.constant dense<0.000000e+00> : vector<8x512xf32>
    %12 = tpu.matmul %9, %6, %cst_13 {dimension_numbers = #tpu.dot_dimension_numbers<[1], [0], [0], [1], [0, 0, 1, 1], [], []>} : vector<8x128xf32>, vector<128x512xf32>, vector<8x512xf32> -> vector<8x512xf32>
    %13 = arith.addf %11, %12 : vector<8x512xf32>
    %14 = math.tanh %13 : vector<8x512xf32>
    %15 = arith.mulf %14, %7 : vector<8x512xf32>
    %16 = arith.addf %15, %8 : vector<8x512xf32>
    %17 = vector.extract_strided_slice %16 {offsets = [0, 0], sizes = [8, 128], strides = [1, 1]} : vector<8x512xf32> to vector<8x128xf32>
    %18 = vector.extract_strided_slice %16 {offsets = [0, 128], sizes = [8, 128], strides = [1, 1]} : vector<8x512xf32> to vector<8x128xf32>
    %19 = vector.extract_strided_slice %16 {offsets = [0, 256], sizes = [8, 128], strides = [1, 1]} : vector<8x512xf32> to vector<8x128xf32>
    %20 = vector.extract_strided_slice %16 {offsets = [0, 384], sizes = [8, 128], strides = [1, 1]} : vector<8x512xf32> to vector<8x128xf32>
    %21 = arith.mulf %18, %10 : vector<8x128xf32>
    %22 = arith.mulf %17, %19 : vector<8x128xf32>
    %23 = arith.addf %21, %22 : vector<8x128xf32>
    %24 = math.tanh %23 : vector<8x128xf32>
    %25 = arith.mulf %20, %24 : vector<8x128xf32>
    %26 = vector.extract_strided_slice %5 {offsets = [8, 0], sizes = [8, 512], strides = [1, 1]} : vector<64x512xf32> to vector<8x512xf32>
    %cst_14 = arith.constant dense<0.000000e+00> : vector<8x512xf32>
    %27 = tpu.matmul %25, %6, %cst_14 {dimension_numbers = #tpu.dot_dimension_numbers<[1], [0], [0], [1], [0, 0, 1, 1], [], []>} : vector<8x128xf32>, vector<128x512xf32>, vector<8x512xf32> -> vector<8x512xf32>
    %28 = arith.addf %26, %27 : vector<8x512xf32>
    %29 = math.tanh %28 : vector<8x512xf32>
    %30 = arith.mulf %29, %7 : vector<8x512xf32>
    %31 = arith.addf %30, %8 : vector<8x512xf32>
    %32 = vector.extract_strided_slice %31 {offsets = [0, 0], sizes = [8, 128], strides = [1, 1]} : vector<8x512xf32> to vector<8x128xf32>
    %33 = vector.extract_strided_slice %31 {offsets = [0, 128], sizes = [8, 128], strides = [1, 1]} : vector<8x512xf32> to vector<8x128xf32>
    %34 = vector.extract_strided_slice %31 {offsets = [0, 256], sizes = [8, 128], strides = [1, 1]} : vector<8x512xf32> to vector<8x128xf32>
    %35 = vector.extract_strided_slice %31 {offsets = [0, 384], sizes = [8, 128], strides = [1, 1]} : vector<8x512xf32> to vector<8x128xf32>
    %36 = arith.mulf %33, %23 : vector<8x128xf32>
    %37 = arith.mulf %32, %34 : vector<8x128xf32>
    %38 = arith.addf %36, %37 : vector<8x128xf32>
    %39 = math.tanh %38 : vector<8x128xf32>
    %40 = arith.mulf %35, %39 : vector<8x128xf32>
    %41 = vector.extract_strided_slice %5 {offsets = [16, 0], sizes = [8, 512], strides = [1, 1]} : vector<64x512xf32> to vector<8x512xf32>
    %cst_15 = arith.constant dense<0.000000e+00> : vector<8x512xf32>
    %42 = tpu.matmul %40, %6, %cst_15 {dimension_numbers = #tpu.dot_dimension_numbers<[1], [0], [0], [1], [0, 0, 1, 1], [], []>} : vector<8x128xf32>, vector<128x512xf32>, vector<8x512xf32> -> vector<8x512xf32>
    %43 = arith.addf %41, %42 : vector<8x512xf32>
    %44 = math.tanh %43 : vector<8x512xf32>
    %45 = arith.mulf %44, %7 : vector<8x512xf32>
    %46 = arith.addf %45, %8 : vector<8x512xf32>
    %47 = vector.extract_strided_slice %46 {offsets = [0, 0], sizes = [8, 128], strides = [1, 1]} : vector<8x512xf32> to vector<8x128xf32>
    %48 = vector.extract_strided_slice %46 {offsets = [0, 128], sizes = [8, 128], strides = [1, 1]} : vector<8x512xf32> to vector<8x128xf32>
    %49 = vector.extract_strided_slice %46 {offsets = [0, 256], sizes = [8, 128], strides = [1, 1]} : vector<8x512xf32> to vector<8x128xf32>
    %50 = vector.extract_strided_slice %46 {offsets = [0, 384], sizes = [8, 128], strides = [1, 1]} : vector<8x512xf32> to vector<8x128xf32>
    %51 = arith.mulf %48, %38 : vector<8x128xf32>
    %52 = arith.mulf %47, %49 : vector<8x128xf32>
    %53 = arith.addf %51, %52 : vector<8x128xf32>
    %54 = math.tanh %53 : vector<8x128xf32>
    %55 = arith.mulf %50, %54 : vector<8x128xf32>
    %56 = vector.extract_strided_slice %5 {offsets = [24, 0], sizes = [8, 512], strides = [1, 1]} : vector<64x512xf32> to vector<8x512xf32>
    %cst_16 = arith.constant dense<0.000000e+00> : vector<8x512xf32>
    %57 = tpu.matmul %55, %6, %cst_16 {dimension_numbers = #tpu.dot_dimension_numbers<[1], [0], [0], [1], [0, 0, 1, 1], [], []>} : vector<8x128xf32>, vector<128x512xf32>, vector<8x512xf32> -> vector<8x512xf32>
    %58 = arith.addf %56, %57 : vector<8x512xf32>
    %59 = math.tanh %58 : vector<8x512xf32>
    %60 = arith.mulf %59, %7 : vector<8x512xf32>
    %61 = arith.addf %60, %8 : vector<8x512xf32>
    %62 = vector.extract_strided_slice %61 {offsets = [0, 0], sizes = [8, 128], strides = [1, 1]} : vector<8x512xf32> to vector<8x128xf32>
    %63 = vector.extract_strided_slice %61 {offsets = [0, 128], sizes = [8, 128], strides = [1, 1]} : vector<8x512xf32> to vector<8x128xf32>
    %64 = vector.extract_strided_slice %61 {offsets = [0, 256], sizes = [8, 128], strides = [1, 1]} : vector<8x512xf32> to vector<8x128xf32>
    %65 = vector.extract_strided_slice %61 {offsets = [0, 384], sizes = [8, 128], strides = [1, 1]} : vector<8x512xf32> to vector<8x128xf32>
    %66 = arith.mulf %63, %53 : vector<8x128xf32>
    %67 = arith.mulf %62, %64 : vector<8x128xf32>
    %68 = arith.addf %66, %67 : vector<8x128xf32>
    %69 = math.tanh %68 : vector<8x128xf32>
    %70 = arith.mulf %65, %69 : vector<8x128xf32>
    %71 = vector.extract_strided_slice %5 {offsets = [32, 0], sizes = [8, 512], strides = [1, 1]} : vector<64x512xf32> to vector<8x512xf32>
    %cst_17 = arith.constant dense<0.000000e+00> : vector<8x512xf32>
    %72 = tpu.matmul %70, %6, %cst_17 {dimension_numbers = #tpu.dot_dimension_numbers<[1], [0], [0], [1], [0, 0, 1, 1], [], []>} : vector<8x128xf32>, vector<128x512xf32>, vector<8x512xf32> -> vector<8x512xf32>
    %73 = arith.addf %71, %72 : vector<8x512xf32>
    %74 = math.tanh %73 : vector<8x512xf32>
    %75 = arith.mulf %74, %7 : vector<8x512xf32>
    %76 = arith.addf %75, %8 : vector<8x512xf32>
    %77 = vector.extract_strided_slice %76 {offsets = [0, 0], sizes = [8, 128], strides = [1, 1]} : vector<8x512xf32> to vector<8x128xf32>
    %78 = vector.extract_strided_slice %76 {offsets = [0, 128], sizes = [8, 128], strides = [1, 1]} : vector<8x512xf32> to vector<8x128xf32>
    %79 = vector.extract_strided_slice %76 {offsets = [0, 256], sizes = [8, 128], strides = [1, 1]} : vector<8x512xf32> to vector<8x128xf32>
    %80 = vector.extract_strided_slice %76 {offsets = [0, 384], sizes = [8, 128], strides = [1, 1]} : vector<8x512xf32> to vector<8x128xf32>
    %81 = arith.mulf %78, %68 : vector<8x128xf32>
    %82 = arith.mulf %77, %79 : vector<8x128xf32>
    %83 = arith.addf %81, %82 : vector<8x128xf32>
    %84 = math.tanh %83 : vector<8x128xf32>
    %85 = arith.mulf %80, %84 : vector<8x128xf32>
    %86 = vector.extract_strided_slice %5 {offsets = [40, 0], sizes = [8, 512], strides = [1, 1]} : vector<64x512xf32> to vector<8x512xf32>
    %cst_18 = arith.constant dense<0.000000e+00> : vector<8x512xf32>
    %87 = tpu.matmul %85, %6, %cst_18 {dimension_numbers = #tpu.dot_dimension_numbers<[1], [0], [0], [1], [0, 0, 1, 1], [], []>} : vector<8x128xf32>, vector<128x512xf32>, vector<8x512xf32> -> vector<8x512xf32>
    %88 = arith.addf %86, %87 : vector<8x512xf32>
    %89 = math.tanh %88 : vector<8x512xf32>
    %90 = arith.mulf %89, %7 : vector<8x512xf32>
    %91 = arith.addf %90, %8 : vector<8x512xf32>
    %92 = vector.extract_strided_slice %91 {offsets = [0, 0], sizes = [8, 128], strides = [1, 1]} : vector<8x512xf32> to vector<8x128xf32>
    %93 = vector.extract_strided_slice %91 {offsets = [0, 128], sizes = [8, 128], strides = [1, 1]} : vector<8x512xf32> to vector<8x128xf32>
    %94 = vector.extract_strided_slice %91 {offsets = [0, 256], sizes = [8, 128], strides = [1, 1]} : vector<8x512xf32> to vector<8x128xf32>
    %95 = vector.extract_strided_slice %91 {offsets = [0, 384], sizes = [8, 128], strides = [1, 1]} : vector<8x512xf32> to vector<8x128xf32>
    %96 = arith.mulf %93, %83 : vector<8x128xf32>
    %97 = arith.mulf %92, %94 : vector<8x128xf32>
    %98 = arith.addf %96, %97 : vector<8x128xf32>
    %99 = math.tanh %98 : vector<8x128xf32>
    %100 = arith.mulf %95, %99 : vector<8x128xf32>
    %101 = vector.extract_strided_slice %5 {offsets = [48, 0], sizes = [8, 512], strides = [1, 1]} : vector<64x512xf32> to vector<8x512xf32>
    %cst_19 = arith.constant dense<0.000000e+00> : vector<8x512xf32>
    %102 = tpu.matmul %100, %6, %cst_19 {dimension_numbers = #tpu.dot_dimension_numbers<[1], [0], [0], [1], [0, 0, 1, 1], [], []>} : vector<8x128xf32>, vector<128x512xf32>, vector<8x512xf32> -> vector<8x512xf32>
    %103 = arith.addf %101, %102 : vector<8x512xf32>
    %104 = math.tanh %103 : vector<8x512xf32>
    %105 = arith.mulf %104, %7 : vector<8x512xf32>
    %106 = arith.addf %105, %8 : vector<8x512xf32>
    %107 = vector.extract_strided_slice %106 {offsets = [0, 0], sizes = [8, 128], strides = [1, 1]} : vector<8x512xf32> to vector<8x128xf32>
    %108 = vector.extract_strided_slice %106 {offsets = [0, 128], sizes = [8, 128], strides = [1, 1]} : vector<8x512xf32> to vector<8x128xf32>
    %109 = vector.extract_strided_slice %106 {offsets = [0, 256], sizes = [8, 128], strides = [1, 1]} : vector<8x512xf32> to vector<8x128xf32>
    %110 = vector.extract_strided_slice %106 {offsets = [0, 384], sizes = [8, 128], strides = [1, 1]} : vector<8x512xf32> to vector<8x128xf32>
    %111 = arith.mulf %108, %98 : vector<8x128xf32>
    %112 = arith.mulf %107, %109 : vector<8x128xf32>
    %113 = arith.addf %111, %112 : vector<8x128xf32>
    %114 = math.tanh %113 : vector<8x128xf32>
    %115 = arith.mulf %110, %114 : vector<8x128xf32>
    %116 = vector.extract_strided_slice %5 {offsets = [56, 0], sizes = [8, 512], strides = [1, 1]} : vector<64x512xf32> to vector<8x512xf32>
    %cst_20 = arith.constant dense<0.000000e+00> : vector<8x512xf32>
    %117 = tpu.matmul %115, %6, %cst_20 {dimension_numbers = #tpu.dot_dimension_numbers<[1], [0], [0], [1], [0, 0, 1, 1], [], []>} : vector<8x128xf32>, vector<128x512xf32>, vector<8x512xf32> -> vector<8x512xf32>
    %118 = arith.addf %116, %117 : vector<8x512xf32>
    %119 = math.tanh %118 : vector<8x512xf32>
    %120 = arith.mulf %119, %7 : vector<8x512xf32>
    %121 = arith.addf %120, %8 : vector<8x512xf32>
    %122 = vector.extract_strided_slice %121 {offsets = [0, 0], sizes = [8, 128], strides = [1, 1]} : vector<8x512xf32> to vector<8x128xf32>
    %123 = vector.extract_strided_slice %121 {offsets = [0, 128], sizes = [8, 128], strides = [1, 1]} : vector<8x512xf32> to vector<8x128xf32>
    %124 = vector.extract_strided_slice %121 {offsets = [0, 256], sizes = [8, 128], strides = [1, 1]} : vector<8x512xf32> to vector<8x128xf32>
    %125 = vector.extract_strided_slice %121 {offsets = [0, 384], sizes = [8, 128], strides = [1, 1]} : vector<8x512xf32> to vector<8x128xf32>
    %126 = arith.mulf %123, %113 : vector<8x128xf32>
    %127 = arith.mulf %122, %124 : vector<8x128xf32>
    %128 = arith.addf %126, %127 : vector<8x128xf32>
    %129 = math.tanh %128 : vector<8x128xf32>
    %130 = arith.mulf %125, %129 : vector<8x128xf32>
    %c0_21 = arith.constant 0 : index
    %c0_22 = arith.constant 0 : index
    %131 = vector.load %arg6[%c0_21, %c0_22] : memref<128x128xf32, #tpu.memory_space<vmem>>, vector<128x128xf32>
    %cst_23 = arith.constant dense<0.000000e+00> : vector<8x128xf32>
    %132 = tpu.matmul %130, %131, %cst_23 {dimension_numbers = #tpu.dot_dimension_numbers<[1], [0], [0], [1], [0, 0, 1, 1], [], []>} : vector<8x128xf32>, vector<128x128xf32>, vector<8x128xf32> -> vector<8x128xf32>
    %c0_24 = arith.constant 0 : index
    %c0_25 = arith.constant 0 : index
    %133 = vector.load %arg7[%c0_24, %c0_25] : memref<1x128xf32, #tpu.memory_space<vmem>>, vector<1x128xf32>
    %134 = vector.broadcast %133 : vector<1x128xf32> to vector<8x128xf32>
    %135 = arith.addf %132, %134 : vector<8x128xf32>
    %c0_26 = arith.constant 0 : index
    %c0_27 = arith.constant 0 : index
    %136 = vector.load %arg8[%c0_26, %c0_27] : memref<8x128xf32, #tpu.memory_space<vmem>>, vector<8x128xf32>
    tpu.vector_store %arg8[%c0_26, %c0_27], %135 {strides = array<i32>} : memref<8x128xf32, #tpu.memory_space<vmem>>, vector<8x128xf32>,
    return
  }
}

</mosaic_0001>

<bundles_post_ra>
// kernel: tpu_custom_call.1
= control target key start
LH: loop header
LB: loop body
LE: loop exit
PB: predicated region body
PF: predicated region fallthrough
CT: control target
= control target key end

     0   :  { %13 = vsyncpa [#allocation3], 0  ;;  %s3378_s0 = inlined_call_operand.vmem [shape: f32[64,8], index: 0, kind: input, shape index: {}]   ;;  %s3379_s1 = inlined_call_operand.vmem [shape: f32[8,512], index: 1, kind: input, shape index: {}]   ;;  %s3380_s2 = inlined_call_operand.hbm [shape: f32[128,512], index: 2, kind: input, shape index: {}]   ;;  %s3381_s3 = inlined_call_operand.vmem [shape: f32[1,512], index: 3, kind: input, shape index: {}]   ;;  %s3382_s4 = inlined_call_operand.vmem [shape: f32[8,512], index: 4, kind: input, shape index: {}]   ;;  %s3383_s5 = inlined_call_operand.hbm [shape: f32[8,512], index: 5, kind: input, shape index: {}]   ;;  %s3384_s6 = inlined_call_operand.hbm [shape: f32[128,128], index: 6, kind: input, shape index: {}]   ;;  %s3385_s7 = inlined_call_operand.vmem [shape: f32[1,128], index: 7, kind: input, shape index: {}]   ;;  %s3386_s8 = inlined_call_operand.hbm [shape: f32[8,128], index: 8, kind: output, shape index: {}]  }
   0x1   :  { %14 = vsyncpa [#allocation6], 0 }
   0x2   :  { %15 = vsyncpa [#allocation4], 0  ;;  %s2694_s27 = smov [#allocation5]   ;;  %s2695_s29 = smov [#allocation2]  }
   0x3   :  { %s42_s28 = sshll.u32 %s2694_s27, 4  ;;  %s25_s30 = sshll.u32 %s2695_s29, 4  ;;  %s43_s28 = int_to_ptr.vmem [resolvable:$true] %s42_s28  ;;  %s2750_s30 = int_to_ptr.vmem [resolvable:$true] %s25_s30 }
   0x4   :  { %s2600_s11 = scalar_lea.hbm %s3383_s5, 512 }
   0x5   :  { %p2601_p0 = scmp.ne.s32.totalorder %s3383_s5, %s2600_s11  ;;  %p2604_p1 = scmp.lt.u32.totalorder %s2600_s11, %s3383_s5 }
   0x7   :  { %p2606_p2 = pnand %p2604_p1, %p2601_p0 }
   0x9   :  { %2609 = shalt.err (!%p2606_p2)
}
   0xa   :  { %s2610_s16 = scalar_lea.vmem %s43_s28, 512  ;;  %p2615_p4 = scmp.lt.s32.totalorder %s43_s28, %s43_s28 }
   0xb   :  { %p2611_p3 = scmp.ne.s32.totalorder %s43_s28, %s2610_s16  ;;  %p2616_p5 = scmp.lt.s32.totalorder %s2610_s16, %s2610_s16 }
   0xd   :  { %p2617_p6 = por %p2616_p5, %p2615_p4 }
   0xf   :  { %p2618_p7 = pnand %p2617_p6, %p2611_p3 }
  0x11   :  { %2621 = shalt.err (!%p2618_p7)
}
  0x12   :  { %45 = dma.hbm_to_vmem [thread:$0]  %s3383_s5, 512, %s43_s28, [#allocation6]  }
  0x13   :  { %s2622_s21 = scalar_lea.hbm %s3380_s2, 8192 }
  0x14   :  { %p2623_p8 = scmp.ne.s32.totalorder %s3380_s2, %s2622_s21  ;;  %p2626_p9 = scmp.lt.u32.totalorder %s2622_s21, %s3380_s2 }
  0x16   :  { %p2628_p10 = pnand %p2626_p9, %p2623_p8 }
  0x18   :  { %2631 = shalt.err (!%p2628_p10)
}
  0x19   :  { %s2632_s26 = scalar_lea.vmem %s2750_s30, 8192  ;;  %p2637_p12 = scmp.lt.s32.totalorder %s2750_s30, %s2750_s30 }
  0x1a   :  { %p2633_p11 = scmp.ne.s32.totalorder %s2750_s30, %s2632_s26  ;;  %p2638_p13 = scmp.lt.s32.totalorder %s2632_s26, %s2632_s26 }
  0x1c   :  { %p2639_p0 = por %p2638_p13, %p2637_p12 }
  0x1e   :  { %p2640_p1 = pnand %p2639_p0, %p2633_p11 }
  0x20   :  { %2643 = shalt.err (!%p2640_p1)
}
  0x21   :  { %s2696_s5 = smov 512   ;;  %s2697_s27 = smov 32  }
  0x22   :  { %31 = dma.hbm_to_vmem [thread:$0]  %s3380_s2, 8192, %s2750_s30, [#allocation3], %s2696_s5, %s2696_s5, %s2697_s27  }
  0x23   :  { %s2698_s9 = smov [#allocation7]   ;;  %s2644_s13 = scalar_lea.hbm %s3384_s6, 2048 }
  0x24   :  { %s51_s10 = sshll.u32 %s2698_s9, 4  ;;  %p2645_p2 = scmp.ne.s32.totalorder %s3384_s6, %s2644_s13  ;;  %s52_s10 = int_to_ptr.vmem [resolvable:$true] %s51_s10 }
  0x25   :  { %p2648_p3 = scmp.lt.u32.totalorder %s2644_s13, %s3384_s6 }
  0x27   :  { %p2650_p4 = pnand %p2648_p3, %p2645_p2 }
  0x29   :  { %2653 = shalt.err (!%p2650_p4)
}
  0x2a   :  { %s2654_s18 = scalar_lea.vmem %s52_s10, 2048  ;;  %p2659_p6 = scmp.lt.s32.totalorder %s52_s10, %s52_s10 }
  0x2b   :  { %p2655_p5 = scmp.ne.s32.totalorder %s52_s10, %s2654_s18  ;;  %p2660_p7 = scmp.lt.s32.totalorder %s2654_s18, %s2654_s18 }
  0x2d   :  { %p2661_p8 = por %p2660_p7, %p2659_p6 }
  0x2f   :  { %p2662_p9 = pnand %p2661_p8, %p2655_p5 }
  0x31   :  { %2665 = shalt.err (!%p2662_p9)
}
  0x32   :  { %s2699_s2 = smov 128   ;;  %s2700_s30 = smov 8  }
  0x33   :  { %57 = dma.hbm_to_vmem [thread:$0]  %s3384_s6, 2048, %s52_s10, [#allocation6], %s2699_s2, %s2699_s2, %s2700_s30  }
  0x34   :  { %2688 = dma.done.wait [#allocation3], 8192  }
  0x35   :  { %2689 = vsyncadd [#allocation3], 4294959104 }
  0x36   :  { %2690 = dma.done.wait [#allocation6], 2560  }
  0x37   :  { %2691 = vsyncadd [#allocation6], 4294964736  ;;  %v2701_v0 = vmov 0.0   ;;  %v78_v1 = vld [vmem:[%s3379_s1 + $0x8] sm:$0xff]  ;;  %v80_v2 = vld [vmem:[%s3379_s1 + $0x18] sm:$0xff]  ;;  %vm103_vm0 = vcmask 64512  }
  0x38   :  { %192 = vmatprep.mubr.f32.mxu0 %v2701_v0  ;;  %305 = vmatprep.mubr.f32.mxu1 %v2701_v0  ;;  %v77_v3 = vld [vmem:[%s3379_s1] sm:$0xff]  ;;  %v79_v4 = vld [vmem:[%s3379_s1 + $0x10] sm:$0xff]  ;;  %v355_v6 = vld [vmem:[#allocation2 + $0x8] sm:$0xff]  ;;  %vm2703_vm1 = vmmov 0   ;;  %s2704_s5 = smov [#allocation8]  }
  0x39   :  { %128 = vmatprep.subr.mxu0 %v78_v1  ;;  %241 = vmatprep.subr.mxu1 %v80_v2  ;;  %v69_v5 = vld [vmem:[%s3378_s0] sm:$0xff]  ;;  %v359_v7 = vld [vmem:[#allocation2 + $0x28] sm:$0xff]  ;;  %v357_v8 = vld [vmem:[#allocation2 + $0x18] sm:$0xff]  ;;  %s1830_s27 = sshll.u32 %s2704_s5, 4  ;;  %s1831_s27 = int_to_ptr.vmem [resolvable:$true] %s1830_s27 }
  0x3a   :  { %129 = vmatpush1.msra.mxu0 %v77_v3  ;;  %242 = vmatpush1.msra.mxu1 %v79_v4  ;;  %v361_v9 = vld [vmem:[#allocation2 + $0x38] sm:$0xff]  ;;  %v2812_v10 = vpack.c.bf16 %v359_v7, %v355_v6  ;;  %v354_v12 = vld [vmem:[#allocation2] sm:$0xff]  ;;  %v356_v14 = vld [vmem:[#allocation2 + $0x10] sm:$0xff]  ;;  %s2666_s28 = scalar_lea.vmem %s1831_s27, 128  ;;  %p2671_p11 = scmp.lt.s32.totalorder %s1831_s27, %s1831_s27 }
  0x3b   :  { %1840 = vmatmul.mubr.msk.f32.vlgmr.msra.gmra.mrb[0].mxu0 %vm103_vm0, %v69_v5  ;;  %1848 = vmatmul.mubr.msk.f32.vlgmr.msra.gmra.mrb[0].mxu1 %vm103_vm0, %v69_v5  ;;  %v2814_v11 = vpack.c.bf16 %v361_v9, %v357_v8  ;;  %v358_v13 = vld [vmem:[#allocation2 + $0x20] sm:$0xff]  ;;  %v360_v16 = vld [vmem:[#allocation2 + $0x30] sm:$0xff]  ;;  %v70_v17 = vld [vmem:[%s3378_s0 + $0x8] sm:$0xff]  ;;  %p2667_p10 = scmp.ne.s32.totalorder %s1831_s27, %s2666_s28  ;;  %p2672_p12 = scmp.lt.s32.totalorder %s2666_s28, %s2666_s28 }
  0x3c   :  { %v2816_v15 = vpack.c.bf16 %v358_v13, %v354_v12  ;;  %198 = vmatprep.mubr.f32.mxu0 %v2701_v0  ;;  %311 = vmatprep.mubr.f32.mxu1 %v2701_v0  ;;  %v363_v18 = vld [vmem:[#allocation2 + $0x48] sm:$0xff]  ;;  %v2825_v19 = vpack.c.bf16 %v360_v16, %v356_v14  ;;  %v365_v21 = vld [vmem:[#allocation2 + $0x58] sm:$0xff]  ;;  %v362_v25 = vld [vmem:[#allocation2 + $0x40] sm:$0xff] }
  0x3d   :  { %1910 = vmatprep.subr.bf16.mxu0 %v2812_v10  ;;  %1942 = vmatprep.subr.bf16.mxu1 %v2814_v11  ;;  %v367_v20 = vld [vmem:[#allocation2 + $0x68] sm:$0xff]  ;;  %v369_v22 = vld [vmem:[#allocation2 + $0x78] sm:$0xff]  ;;  %v366_v26 = vld [vmem:[#allocation2 + $0x60] sm:$0xff]  ;;  %p2673_p13 = por %p2672_p12, %p2671_p11 }
  0x3e   :  { %1912 = vmatpush1.bf16.msra.mxu0 %v2816_v15  ;;  %v2828_v23 = vpack.c.bf16 %v367_v20, %v363_v18  ;;  %v2830_v24 = vpack.c.bf16 %v369_v22, %v365_v21  ;;  %v364_v27 = vld [vmem:[#allocation2 + $0x50] sm:$0xff]  ;;  %1944 = vmatpush1.bf16.msra.mxu1 %v2825_v19  ;;  %v2834_v28 = vpack.c.bf16 %v366_v26, %v362_v25  ;;  %v371_v31 = vld [vmem:[#allocation2 + $0x88] sm:$0xff]  ;;  %v373_v34 = vld [vmem:[#allocation2 + $0x98] sm:$0xff] }
  0x3f   :  { %1841 = vmatmul.mubr.msk.f32.gmra.mrb[2].mxu0 %vm103_vm0, %v70_v17  ;;  %v368_v29 = vld [vmem:[#allocation2 + $0x70] sm:$0xff]  ;;  %1849 = vmatmul.mubr.msk.f32.gmra.mrb[2].mxu1 %vm103_vm0, %v70_v17  ;;  %v375_v33 = vld [vmem:[#allocation2 + $0xa8] sm:$0xff]  ;;  %v377_v35 = vld [vmem:[#allocation2 + $0xb8] sm:$0xff]  ;;  %p2674_p0 = pnand %p2673_p13, %p2667_p10 }
  0x40   :  { %v71_v30 = vld [vmem:[%s3378_s0 + $0x10] sm:$0xff]  ;;  %1914 = vmatprep.subr.bf16.mxu0 %v2828_v23  ;;  %v2841_v32 = vpack.c.bf16 %v368_v29, %v364_v27  ;;  %1946 = vmatprep.subr.bf16.mxu1 %v2830_v24  ;;  %v2845_v36 = vpack.c.bf16 %v375_v33, %v371_v31  ;;  %v2847_v37 = vpack.c.bf16 %v377_v35, %v373_v34  ;;  %v370_v38 = vld [vmem:[#allocation2 + $0x80] sm:$0xff]  ;;  %v72_v43 = vld [vmem:[%s3378_s0 + $0x18] sm:$0xff] }
  0x41   :  { %204 = vmatprep.mubr.f32.mxu0 %v2701_v0  ;;  %v374_v39 = vld [vmem:[#allocation2 + $0xa0] sm:$0xff]  ;;  %v372_v40 = vld [vmem:[#allocation2 + $0x90] sm:$0xff]  ;;  %317 = vmatprep.mubr.f32.mxu1 %v2701_v0  ;;  %v379_v44 = vld [vmem:[#allocation2 + $0xc8] sm:$0xff] }
  0x42   :  { %1916 = vmatpush1.bf16.msra.mxu0 %v2834_v28  ;;  %v2851_v41 = vpack.c.bf16 %v374_v39, %v370_v38  ;;  %v376_v42 = vld [vmem:[#allocation2 + $0xb0] sm:$0xff]  ;;  %1948 = vmatpush1.bf16.msra.mxu1 %v2841_v32  ;;  %v383_v46 = vld [vmem:[#allocation2 + $0xe8] sm:$0xff]  ;;  %v381_v47 = vld [vmem:[#allocation2 + $0xd8] sm:$0xff] }
  0x43   :  { %1842 = vmatmul.mubr.msk.f32.gmra.mrb[4].mxu0 %vm103_vm0, %v71_v30  ;;  %v2858_v45 = vpack.c.bf16 %v376_v42, %v372_v40  ;;  %v385_v48 = vld [vmem:[#allocation2 + $0xf8] sm:$0xff]  ;;  %1850 = vmatmul.mubr.msk.f32.gmra.mrb[4].mxu1 %vm103_vm0, %v71_v30  ;;  %v2862_v49 = vpack.c.bf16 %v383_v46, %v379_v44  ;;  %v378_v50 = vld [vmem:[#allocation2 + $0xc0] sm:$0xff]  ;;  %v380_v52 = vld [vmem:[#allocation2 + $0xd0] sm:$0xff] }
  0x44   :  { %1918 = vmatprep.subr.bf16.mxu0 %v2845_v36  ;;  %v382_v51 = vld [vmem:[#allocation2 + $0xe0] sm:$0xff]  ;;  %1950 = vmatprep.subr.bf16.mxu1 %v2847_v37  ;;  %v2866_v53 = vpack.c.bf16 %v385_v48, %v381_v47  ;;  %v384_v54 = vld [vmem:[#allocation2 + $0xf0] sm:$0xff]  ;;  %v387_v55 = vld [vmem:[#allocation2 + $0x108] sm:$0xff] }
  0x45   :  { %210 = vmatprep.mubr.f32.mxu0 %v2701_v0  ;;  %323 = vmatprep.mubr.f32.mxu1 %v2701_v0  ;;  %v2870_v56 = vpack.c.bf16 %v382_v51, %v378_v50  ;;  %v391_v57 = vld [vmem:[#allocation2 + $0x128] sm:$0xff]  ;;  %v389_v58 = vld [vmem:[#allocation2 + $0x118] sm:$0xff]  ;;  %v2874_v60 = vpack.c.bf16 %v384_v54, %v380_v52  ;;  %v386_v61 = vld [vmem:[#allocation2 + $0x100] sm:$0xff] }
  0x46   :  { %1920 = vmatpush1.bf16.msra.mxu0 %v2851_v41  ;;  %v393_v59 = vld [vmem:[#allocation2 + $0x138] sm:$0xff]  ;;  %1952 = vmatpush1.bf16.msra.mxu1 %v2858_v45  ;;  %v390_v62 = vld [vmem:[#allocation2 + $0x120] sm:$0xff]  ;;  %v2881_v1 = vpack.c.bf16 %v391_v57, %v387_v55  ;;  %v388_v2 = vld [vmem:[#allocation2 + $0x110] sm:$0xff] }
  0x47   :  { %1843 = vmatmul.mubr.msk.f32.gmra.mrb[6].mxu0 %vm103_vm0, %v72_v43  ;;  %1851 = vmatmul.mubr.msk.f32.gmra.mrb[6].mxu1 %vm103_vm0, %v72_v43  ;;  %v73_v63 = vld [vmem:[%s3378_s0 + $0x20] sm:$0xff]  ;;  %v392_v3 = vld [vmem:[#allocation2 + $0x130] sm:$0xff]  ;;  %v2885_v4 = vpack.c.bf16 %v393_v59, %v389_v58  ;;  %v395_v5 = vld [vmem:[#allocation2 + $0x148] sm:$0xff]  ;;  %v2889_v7 = vpack.c.bf16 %v390_v62, %v386_v61  ;;  %v83_v62 = vlaneseq }
  0x48   :  { %1922 = vmatprep.subr.bf16.mxu0 %v2862_v49  ;;  %1954 = vmatprep.subr.bf16.mxu1 %v2866_v53  ;;  %v399_v6 = vld [vmem:[#allocation2 + $0x168] sm:$0xff]  ;;  %v397_v8 = vld [vmem:[#allocation2 + $0x158] sm:$0xff]  ;;  %v2893_v12 = vpack.c.bf16 %v392_v3, %v388_v2  ;;  %v394_v13 = vld [vmem:[#allocation2 + $0x140] sm:$0xff] }
  0x49   :  { %216 = vmatprep.mubr.f32.mxu0 %v2701_v0  ;;  %329 = vmatprep.mubr.f32.mxu1 %v2701_v0  ;;  %v401_v9 = vld [vmem:[#allocation2 + $0x178] sm:$0xff]  ;;  %v398_v14 = vld [vmem:[#allocation2 + $0x160] sm:$0xff]  ;;  %v74_v16 = vld [vmem:[%s3378_s0 + $0x28] sm:$0xff]  ;;  %v2900_v17 = vpack.c.bf16 %v399_v6, %v395_v5 }
  0x4a   :  { %1924 = vmatpush1.bf16.msra.mxu0 %v2870_v56  ;;  %1956 = vmatpush1.bf16.msra.mxu1 %v2874_v60  ;;  %v396_v18 = vld [vmem:[#allocation2 + $0x150] sm:$0xff]  ;;  %v2904_v21 = vpack.c.bf16 %v401_v9, %v397_v8  ;;  %v403_v22 = vld [vmem:[#allocation2 + $0x188] sm:$0xff]  ;;  %v2908_v26 = vpack.c.bf16 %v398_v14, %v394_v13  ;;  %v405_v27 = vld [vmem:[#allocation2 + $0x198] sm:$0xff] }
  0x4b   :  { %1844 = vmatmul.mubr.msk.f32.gmra.mrb[8].mxu0 %vm103_vm0, %v73_v63  ;;  %1852 = vmatmul.mubr.msk.f32.gmra.mrb[8].mxu1 %vm103_vm0, %v73_v63  ;;  %v400_v20 = vld [vmem:[#allocation2 + $0x170] sm:$0xff]  ;;  %v407_v25 = vld [vmem:[#allocation2 + $0x1a8] sm:$0xff]  ;;  %v409_v29 = vld [vmem:[#allocation2 + $0x1b8] sm:$0xff]  ;;  %v84_v63 = vshrl.u32 %v83_v62, 7 }
  0x4c   :  { %1926 = vmatprep.subr.bf16.mxu0 %v2881_v1  ;;  %1958 = vmatprep.subr.bf16.mxu1 %v2885_v4  ;;  %v2912_v30 = vpack.c.bf16 %v400_v20, %v396_v18  ;;  %v402_v31 = vld [vmem:[#allocation2 + $0x180] sm:$0xff]  ;;  %v75_v34 = vld [vmem:[%s3378_s0 + $0x30] sm:$0xff]  ;;  %v2919_v35 = vpack.c.bf16 %v407_v25, %v403_v22  ;;  %v2923_v40 = vpack.c.bf16 %v409_v29, %v405_v27  ;;  %v411_v42 = vld [vmem:[#allocation2 + $0x1c8] sm:$0xff] }
  0x4d   :  { %222 = vmatprep.mubr.f32.mxu0 %v2701_v0  ;;  %335 = vmatprep.mubr.f32.mxu1 %v2701_v0  ;;  %v406_v33 = vld [vmem:[#allocation2 + $0x1a0] sm:$0xff]  ;;  %v404_v38 = vld [vmem:[#allocation2 + $0x190] sm:$0xff]  ;;  %v415_v43 = vld [vmem:[#allocation2 + $0x1e8] sm:$0xff]  ;;  %v85_v2 = vsub.s32 0, %v84_v63  ;;  %v93_v5 = vsub.s32 2, %v84_v63  ;;  %v89_v6 = vsub.s32 1, %v84_v63 }
  0x4e   :  { %1928 = vmatpush1.bf16.msra.mxu0 %v2889_v7  ;;  %1960 = vmatpush1.bf16.msra.mxu1 %v2893_v12  ;;  %v408_v39 = vld [vmem:[#allocation2 + $0x1b0] sm:$0xff]  ;;  %v2927_v44 = vpack.c.bf16 %v406_v33, %v402_v31  ;;  %v413_v46 = vld [vmem:[#allocation2 + $0x1d8] sm:$0xff]  ;;  %v410_v50 = vld [vmem:[#allocation2 + $0x1c0] sm:$0xff]  ;;  %v2938_v54 = vpack.c.bf16 %v415_v43, %v411_v42  ;;  %v97_v29 = vsub.s32 3, %v84_v63 }
  0x4f   :  { %1845 = vmatmul.mubr.msk.f32.gmra.mrb[10].mxu0 %vm103_vm0, %v74_v16  ;;  %1853 = vmatmul.mubr.msk.f32.gmra.mrb[10].mxu1 %vm103_vm0, %v74_v16  ;;  %v417_v47 = vld [vmem:[#allocation2 + $0x1f8] sm:$0xff]  ;;  %v2931_v48 = vpack.c.bf16 %v408_v39, %v404_v38  ;;  %v414_v51 = vld [vmem:[#allocation2 + $0x1e0] sm:$0xff]  ;;  %v412_v55 = vld [vmem:[#allocation2 + $0x1d0] sm:$0xff] }
  0x50   :  { %1930 = vmatprep.subr.bf16.mxu0 %v2900_v17  ;;  %1962 = vmatprep.subr.bf16.mxu1 %v2904_v21  ;;  %v76_v52 = vld [vmem:[%s3378_s0 + $0x38] sm:$0xff]  ;;  %v416_v57 = vld [vmem:[#allocation2 + $0x1f0] sm:$0xff]  ;;  %v2942_v58 = vpack.c.bf16 %v417_v47, %v413_v46  ;;  %v2946_v59 = vpack.c.bf16 %v414_v51, %v410_v50  ;;  %v81_v3 = vld [vmem:[%s3381_s3] sm:$0xf] }
  0x51   :  { %228 = vmatprep.mubr.f32.mxu0 %v2701_v0  ;;  %341 = vmatprep.mubr.f32.mxu1 %v2701_v0  ;;  %v2950_v61 = vpack.c.bf16 %v416_v57, %v412_v55  ;;  %v3000_v8 = vrot.slane %v81_v3, %v85_v2  ;;  %v3002_v9 = vrot.slane %v81_v3, %v93_v5  ;;  %v3014_v33 = vld [vmem:[%s3382_s4] sm:$0xff]  ;;  %v3027_v43 = vld [vmem:[%s3382_s4 + $0x8] sm:$0xff]  ;;  %v3030_v50 = vld [vmem:[#allocation5 + $0x10] sm:$0xff] }
  0x52   :  { %1932 = vmatpush1.bf16.msra.mxu0 %v2908_v26  ;;  %1964 = vmatpush1.bf16.msra.mxu1 %v2912_v30  ;;  %v3004_v13 = vrot.slane %v81_v3, %v89_v6  ;;  %v3009_v31 = vrot.slane %v81_v3, %v97_v29  ;;  %v3022_v42 = vld [vmem:[#allocation5] sm:$0xff]  ;;  %v3033_v55 = vld [vmem:[#allocation5 + $0x8] sm:$0xff] }
  0x53   :  { %1846 = vmatmul.mubr.msk.f32.gmra.mrb[12].mxu0 %vm103_vm0, %v75_v34  ;;  %1854 = vmatmul.mubr.msk.f32.gmra.mrb[12].mxu1 %vm103_vm0, %v75_v34  ;;  %v3019_v34 = vld [vmem:[%s3382_s4 + $0x10] sm:$0xff] }
  0x54   :  { %1934 = vmatprep.subr.bf16.mxu0 %v2919_v35  ;;  %1966 = vmatprep.subr.bf16.mxu1 %v2923_v40 }
  0x55   :  { %234 = vmatprep.mubr.f32.mxu0 %v2701_v0  ;;  %347 = vmatprep.mubr.f32.mxu1 %v2701_v0 }
  0x56   :  { %1936 = vmatpush1.bf16.msra.mxu0 %v2927_v44  ;;  %1968 = vmatpush1.bf16.msra.mxu1 %v2931_v48 }
  0x57   :  { %1847 = vmatmul.mubr.msk.f32.gmra.mrb[14].mxu0 %vm103_vm0, %v76_v52  ;;  %1855 = vmatmul.mubr.msk.f32.gmra.mrb[14].mxu1 %vm103_vm0, %v76_v52 }
  0x58   :  { %1938 = vmatprep.subr.bf16.mxu0 %v2938_v54  ;;  %1970 = vmatprep.subr.bf16.mxu1 %v2942_v58 }
  0x59   :  { %490 = vmatprep.mubr.f32.mxu0 %v2701_v0  ;;  %561 = vmatprep.mubr.f32.mxu1 %v2701_v0 }
  0x5a   :  { %1940 = vmatpush1.bf16.msra.mxu0 %v2946_v59  ;;  %1972 = vmatpush1.bf16.msra.mxu1 %v2950_v61 }
  0x5b   :  { %1974 = vmatprep.subr.bf16.mxu0 %v2812_v10  ;;  %2006 = vmatprep.subr.bf16.mxu1 %v2814_v11 }
  0x5d   :  { %491 = vmatmul.mubr.f32.vlgmr.msra.gmra.mrb[0].mxu0 %v2701_v0  ;;  %562 = vmatmul.mubr.f32.vlgmr.msra.gmra.mrb[0].mxu1 %v2701_v0 }
  0x5e   :  { %1976 = vmatpush1.bf16.msra.mxu0 %v2816_v15  ;;  %2008 = vmatpush1.bf16.msra.mxu1 %v2825_v19 }
  0x5f   :  { %1978 = vmatprep.subr.bf16.mxu0 %v2828_v23  ;;  %2010 = vmatprep.subr.bf16.mxu1 %v2830_v24 }
  0x60   :  { %653 = vmatprep.mubr.f32.mxu0 %v2701_v0  ;;  %724 = vmatprep.mubr.f32.mxu1 %v2701_v0 }
  0x62   :  { %1980 = vmatpush1.bf16.msra.mxu0 %v2834_v28  ;;  %2012 = vmatpush1.bf16.msra.mxu1 %v2841_v32 }
  0x63   :  { %1982 = vmatprep.subr.bf16.mxu0 %v2845_v36  ;;  %2014 = vmatprep.subr.bf16.mxu1 %v2847_v37 }
  0x66   :  { %1984 = vmatpush1.bf16.msra.mxu0 %v2851_v41  ;;  %2016 = vmatpush1.bf16.msra.mxu1 %v2858_v45 }
  0x67   :  { %1986 = vmatprep.subr.bf16.mxu0 %v2862_v49  ;;  %2018 = vmatprep.subr.bf16.mxu1 %v2866_v53 }
  0x6a   :  { %1988 = vmatpush1.bf16.msra.mxu0 %v2870_v56  ;;  %2020 = vmatpush1.bf16.msra.mxu1 %v2874_v60 }
  0x6b   :  { %1990 = vmatprep.subr.bf16.mxu0 %v2881_v1  ;;  %2022 = vmatprep.subr.bf16.mxu1 %v2885_v4 }
  0x6e   :  { %1992 = vmatpush1.bf16.msra.mxu0 %v2889_v7  ;;  %2024 = vmatpush1.bf16.msra.mxu1 %v2893_v12 }
  0x6f   :  { %1994 = vmatprep.subr.bf16.mxu0 %v2900_v17  ;;  %2026 = vmatprep.subr.bf16.mxu1 %v2904_v21 }
  0x72   :  { %1996 = vmatpush1.bf16.msra.mxu0 %v2908_v26  ;;  %2028 = vmatpush1.bf16.msra.mxu1 %v2912_v30 }
  0x73   :  { %1998 = vmatprep.subr.bf16.mxu0 %v2919_v35  ;;  %2030 = vmatprep.subr.bf16.mxu1 %v2923_v40 }
  0x76   :  { %2000 = vmatpush1.bf16.msra.mxu0 %v2927_v44  ;;  %2032 = vmatpush1.bf16.msra.mxu1 %v2931_v48 }
  0x77   :  { %2002 = vmatprep.subr.bf16.mxu0 %v2938_v54  ;;  %2034 = vmatprep.subr.bf16.mxu1 %v2942_v58 }
  0x7a   :  { %2004 = vmatpush1.bf16.msra.mxu0 %v2946_v59  ;;  %2036 = vmatpush1.bf16.msra.mxu1 %v2950_v61 }
  0x7b   :  { %2038 = vmatprep.subr.bf16.mxu0 %v2812_v10  ;;  %2070 = vmatprep.subr.bf16.mxu1 %v2814_v11 }
 0x130   :  { %v492_v14 = vpop.f32.mrb[0].mxu0  ;;  %v563_v18 = vpop.f32.mrb[0].mxu1 }
 0x131   :  { %v2445_v16 = vadd.f32 %v492_v14, %v3000_v8  ;;  %v494_v20 = vpop.f32.mrb[1].mxu0  ;;  %v2461_v22 = vadd.f32 %v563_v18, %v3002_v9  ;;  %v565_v27 = vpop.f32.mrb[1].mxu1 }
 0x132   :  { %v2446_v25 = vadd.f32 %v494_v20, %v3004_v13  ;;  %v2462_v38 = vadd.f32 %v565_v27, %v3009_v31  ;;  %v3048_v20 = vld [vmem:[#allocation5 + $0x18] sm:$0xff] }
 0x133   :  { %2520 = vtanh.f32 %v2445_v16  ;;  %v3045_v16 = vld [vmem:[%s3382_s4 + $0x18] sm:$0xff] }
 0x134   :  { %2522 = vtanh.f32 %v2461_v22 }
 0x135   :  { %2524 = vtanh.f32 %v2446_v25 }
 0x136   :  { %2526 = vtanh.f32 %v2462_v38 }
 0x13d   :  { %v2521_v39 = vpop.eup %2520 }
 0x13e   :  { %v2523_v46 = vpop.eup %2522  ;;  %v576_v47 = vmul.f32 %v2521_v39, %v3014_v33 }
 0x13f   :  { %v2525_v51 = vpop.eup %2524  ;;  %v578_v52 = vmul.f32 %v2523_v46, %v3019_v34 }
 0x140   :  { %v580_v57 = vadd.f32 %v576_v47, %v3022_v42  ;;  %v577_v62 = vmul.f32 %v2525_v51, %v3027_v43  ;;  %v2527_v14 = vpop.eup %2526 }
 0x141   :  { %v582_v63 = vadd.f32 %v578_v52, %v3030_v50  ;;  %v579_v18 = vmul.f32 %v2527_v14, %v3045_v16 }
 0x142   :  { %v581_v2 = vadd.f32 %v577_v62, %v3033_v55 }
 0x143   :  { %v585_v3 = vmul.f32 %v582_v63, %v580_v57  ;;  %v583_v22 = vadd.f32 %v579_v18, %v3048_v20 }
 0x144   :  { %v584_v5 = vmul.f32 0.0, %v581_v2 }
 0x146   :  { %v3039_v6 = vadd.f32 %v585_v3, %v584_v5 }
 0x148   :  { %2528 = vtanh.f32 %v3039_v6 }
 0x152   :  { %v2529_v25 = vpop.eup %2528 }
 0x153   :  { %v588_v27 = vmul.f32 %v2529_v25, %v583_v22 }
 0x155   :  { %654 = vmatmul.mubr.f32.vlgmr.msra.gmra.mrb[2].mxu0 %v588_v27  ;;  %725 = vmatmul.mubr.f32.vlgmr.msra.gmra.mrb[2].mxu1 %v588_v27 }
 0x156   :  { %2040 = vmatpush1.bf16.msra.mxu0 %v2816_v15  ;;  %2072 = vmatpush1.bf16.msra.mxu1 %v2825_v19 }
 0x157   :  { %2042 = vmatprep.subr.bf16.mxu0 %v2828_v23  ;;  %2074 = vmatprep.subr.bf16.mxu1 %v2830_v24 }
 0x158   :  { %816 = vmatprep.mubr.f32.mxu0 %v2701_v0  ;;  %887 = vmatprep.mubr.f32.mxu1 %v2701_v0 }
 0x15a   :  { %2044 = vmatpush1.bf16.msra.mxu0 %v2834_v28  ;;  %2076 = vmatpush1.bf16.msra.mxu1 %v2841_v32 }
 0x15b   :  { %2046 = vmatprep.subr.bf16.mxu0 %v2845_v36  ;;  %2078 = vmatprep.subr.bf16.mxu1 %v2847_v37 }
 0x15e   :  { %2048 = vmatpush1.bf16.msra.mxu0 %v2851_v41  ;;  %2080 = vmatpush1.bf16.msra.mxu1 %v2858_v45 }
 0x15f   :  { %2050 = vmatprep.subr.bf16.mxu0 %v2862_v49  ;;  %2082 = vmatprep.subr.bf16.mxu1 %v2866_v53 }
 0x162   :  { %2052 = vmatpush1.bf16.msra.mxu0 %v2870_v56  ;;  %2084 = vmatpush1.bf16.msra.mxu1 %v2874_v60 }
 0x163   :  { %2054 = vmatprep.subr.bf16.mxu0 %v2881_v1  ;;  %2086 = vmatprep.subr.bf16.mxu1 %v2885_v4 }
 0x166   :  { %2056 = vmatpush1.bf16.msra.mxu0 %v2889_v7  ;;  %2088 = vmatpush1.bf16.msra.mxu1 %v2893_v12 }
 0x167   :  { %2058 = vmatprep.subr.bf16.mxu0 %v2900_v17  ;;  %2090 = vmatprep.subr.bf16.mxu1 %v2904_v21 }
 0x16a   :  { %2060 = vmatpush1.bf16.msra.mxu0 %v2908_v26  ;;  %2092 = vmatpush1.bf16.msra.mxu1 %v2912_v30 }
 0x16b   :  { %2062 = vmatprep.subr.bf16.mxu0 %v2919_v35  ;;  %2094 = vmatprep.subr.bf16.mxu1 %v2923_v40 }
 0x16e   :  { %2064 = vmatpush1.bf16.msra.mxu0 %v2927_v44  ;;  %2096 = vmatpush1.bf16.msra.mxu1 %v2931_v48 }
 0x16f   :  { %2066 = vmatprep.subr.bf16.mxu0 %v2938_v54  ;;  %2098 = vmatprep.subr.bf16.mxu1 %v2942_v58 }
 0x172   :  { %2068 = vmatpush1.bf16.msra.mxu0 %v2946_v59  ;;  %2100 = vmatpush1.bf16.msra.mxu1 %v2950_v61 }
 0x173   :  { %2102 = vmatprep.subr.bf16.mxu0 %v2812_v10  ;;  %2134 = vmatprep.subr.bf16.mxu1 %v2814_v11 }
 0x228   :  { %v655_v29 = vpop.f32.mrb[2].mxu0  ;;  %v726_v38 = vpop.f32.mrb[2].mxu1 }
 0x229   :  { %v2447_v39 = vadd.f32 %v655_v29, %v3000_v8  ;;  %v2463_v46 = vadd.f32 %v726_v38, %v3002_v9  ;;  %v657_v47 = vpop.f32.mrb[3].mxu0  ;;  %v728_v51 = vpop.f32.mrb[3].mxu1 }
 0x22a   :  { %v2448_v52 = vadd.f32 %v657_v47, %v3004_v13  ;;  %v2464_v57 = vadd.f32 %v728_v51, %v3009_v31 }
 0x22b   :  { %2530 = vtanh.f32 %v2447_v39 }
 0x22c   :  { %2532 = vtanh.f32 %v2463_v46 }
 0x22d   :  { %2534 = vtanh.f32 %v2448_v52 }
 0x22e   :  { %2536 = vtanh.f32 %v2464_v57 }
 0x235   :  { %v2531_v62 = vpop.eup %2530 }
 0x236   :  { %v2533_v63 = vpop.eup %2532  ;;  %v739_v2 = vmul.f32 %v2531_v62, %v3014_v33 }
 0x237   :  { %v2535_v3 = vpop.eup %2534  ;;  %v741_v5 = vmul.f32 %v2533_v63, %v3019_v34 }
 0x238   :  { %v743_v14 = vadd.f32 %v739_v2, %v3022_v42  ;;  %v740_v18 = vmul.f32 %v2535_v3, %v3027_v43  ;;  %v2537_v39 = vpop.eup %2536 }
 0x239   :  { %v745_v22 = vadd.f32 %v741_v5, %v3030_v50  ;;  %v742_v46 = vmul.f32 %v2537_v39, %v3045_v16 }
 0x23a   :  { %v744_v25 = vadd.f32 %v740_v18, %v3033_v55 }
 0x23b   :  { %v748_v27 = vmul.f32 %v745_v22, %v743_v14  ;;  %v746_v47 = vadd.f32 %v742_v46, %v3048_v20 }
 0x23c   :  { %v747_v29 = vmul.f32 %v744_v25, %v3039_v6 }
 0x23e   :  { %v3096_v38 = vadd.f32 %v748_v27, %v747_v29 }
 0x240   :  { %2538 = vtanh.f32 %v3096_v38 }
 0x24a   :  { %v2539_v51 = vpop.eup %2538 }
 0x24b   :  { %v751_v52 = vmul.f32 %v2539_v51, %v746_v47 }
 0x24d   :  { %817 = vmatmul.mubr.f32.vlgmr.msra.gmra.mrb[4].mxu0 %v751_v52  ;;  %888 = vmatmul.mubr.f32.vlgmr.msra.gmra.mrb[4].mxu1 %v751_v52 }
 0x24e   :  { %2104 = vmatpush1.bf16.msra.mxu0 %v2816_v15  ;;  %2136 = vmatpush1.bf16.msra.mxu1 %v2825_v19 }
 0x24f   :  { %2106 = vmatprep.subr.bf16.mxu0 %v2828_v23  ;;  %2138 = vmatprep.subr.bf16.mxu1 %v2830_v24 }
 0x250   :  { %979 = vmatprep.mubr.f32.mxu0 %v2701_v0  ;;  %1050 = vmatprep.mubr.f32.mxu1 %v2701_v0 }
 0x252   :  { %2108 = vmatpush1.bf16.msra.mxu0 %v2834_v28  ;;  %2140 = vmatpush1.bf16.msra.mxu1 %v2841_v32 }
 0x253   :  { %2110 = vmatprep.subr.bf16.mxu0 %v2845_v36  ;;  %2142 = vmatprep.subr.bf16.mxu1 %v2847_v37 }
 0x256   :  { %2112 = vmatpush1.bf16.msra.mxu0 %v2851_v41  ;;  %2144 = vmatpush1.bf16.msra.mxu1 %v2858_v45 }
 0x257   :  { %2114 = vmatprep.subr.bf16.mxu0 %v2862_v49  ;;  %2146 = vmatprep.subr.bf16.mxu1 %v2866_v53 }
 0x25a   :  { %2116 = vmatpush1.bf16.msra.mxu0 %v2870_v56  ;;  %2148 = vmatpush1.bf16.msra.mxu1 %v2874_v60 }
 0x25b   :  { %2118 = vmatprep.subr.bf16.mxu0 %v2881_v1  ;;  %2150 = vmatprep.subr.bf16.mxu1 %v2885_v4 }
 0x25e   :  { %2120 = vmatpush1.bf16.msra.mxu0 %v2889_v7  ;;  %2152 = vmatpush1.bf16.msra.mxu1 %v2893_v12 }
 0x25f   :  { %2122 = vmatprep.subr.bf16.mxu0 %v2900_v17  ;;  %2154 = vmatprep.subr.bf16.mxu1 %v2904_v21 }
 0x262   :  { %2124 = vmatpush1.bf16.msra.mxu0 %v2908_v26  ;;  %2156 = vmatpush1.bf16.msra.mxu1 %v2912_v30 }
 0x263   :  { %2126 = vmatprep.subr.bf16.mxu0 %v2919_v35  ;;  %2158 = vmatprep.subr.bf16.mxu1 %v2923_v40 }
 0x266   :  { %2128 = vmatpush1.bf16.msra.mxu0 %v2927_v44  ;;  %2160 = vmatpush1.bf16.msra.mxu1 %v2931_v48 }
 0x267   :  { %2130 = vmatprep.subr.bf16.mxu0 %v2938_v54  ;;  %2162 = vmatprep.subr.bf16.mxu1 %v2942_v58 }
 0x26a   :  { %2132 = vmatpush1.bf16.msra.mxu0 %v2946_v59  ;;  %2164 = vmatpush1.bf16.msra.mxu1 %v2950_v61 }
 0x26b   :  { %2166 = vmatprep.subr.bf16.mxu0 %v2812_v10  ;;  %2198 = vmatprep.subr.bf16.mxu1 %v2814_v11 }
 0x320   :  { %v818_v6 = vpop.f32.mrb[4].mxu0  ;;  %v889_v57 = vpop.f32.mrb[4].mxu1 }
 0x321   :  { %v2449_v62 = vadd.f32 %v818_v6, %v3000_v8  ;;  %v2465_v63 = vadd.f32 %v889_v57, %v3002_v9  ;;  %v820_v2 = vpop.f32.mrb[5].mxu0  ;;  %v891_v3 = vpop.f32.mrb[5].mxu1 }
 0x322   :  { %v2450_v5 = vadd.f32 %v820_v2, %v3004_v13  ;;  %v2466_v14 = vadd.f32 %v891_v3, %v3009_v31 }
 0x323   :  { %2540 = vtanh.f32 %v2449_v62 }
 0x324   :  { %2542 = vtanh.f32 %v2465_v63 }
 0x325   :  { %2544 = vtanh.f32 %v2450_v5 }
 0x326   :  { %2546 = vtanh.f32 %v2466_v14 }
 0x32d   :  { %v2541_v18 = vpop.eup %2540 }
 0x32e   :  { %v2543_v22 = vpop.eup %2542  ;;  %v902_v25 = vmul.f32 %v2541_v18, %v3014_v33 }
 0x32f   :  { %v2545_v27 = vpop.eup %2544  ;;  %v904_v29 = vmul.f32 %v2543_v22, %v3019_v34 }
 0x330   :  { %v906_v39 = vadd.f32 %v902_v25, %v3022_v42  ;;  %v903_v46 = vmul.f32 %v2545_v27, %v3027_v43  ;;  %v2547_v62 = vpop.eup %2546 }
 0x331   :  { %v908_v47 = vadd.f32 %v904_v29, %v3030_v50  ;;  %v905_v63 = vmul.f32 %v2547_v62, %v3045_v16 }
 0x332   :  { %v907_v51 = vadd.f32 %v903_v46, %v3033_v55 }
 0x333   :  { %v911_v52 = vmul.f32 %v908_v47, %v906_v39  ;;  %v909_v2 = vadd.f32 %v905_v63, %v3048_v20 }
 0x334   :  { %v910_v6 = vmul.f32 %v907_v51, %v3096_v38 }
 0x336   :  { %v3146_v57 = vadd.f32 %v911_v52, %v910_v6 }
 0x338   :  { %2548 = vtanh.f32 %v3146_v57 }
 0x342   :  { %v2549_v3 = vpop.eup %2548 }
 0x343   :  { %v914_v5 = vmul.f32 %v2549_v3, %v909_v2 }
 0x345   :  { %980 = vmatmul.mubr.f32.vlgmr.msra.gmra.mrb[6].mxu0 %v914_v5  ;;  %1051 = vmatmul.mubr.f32.vlgmr.msra.gmra.mrb[6].mxu1 %v914_v5 }
 0x346   :  { %2168 = vmatpush1.bf16.msra.mxu0 %v2816_v15  ;;  %2200 = vmatpush1.bf16.msra.mxu1 %v2825_v19 }
 0x347   :  { %2170 = vmatprep.subr.bf16.mxu0 %v2828_v23  ;;  %2202 = vmatprep.subr.bf16.mxu1 %v2830_v24 }
 0x348   :  { %1142 = vmatprep.mubr.f32.mxu0 %v2701_v0  ;;  %1213 = vmatprep.mubr.f32.mxu1 %v2701_v0 }
 0x34a   :  { %2172 = vmatpush1.bf16.msra.mxu0 %v2834_v28  ;;  %2204 = vmatpush1.bf16.msra.mxu1 %v2841_v32 }
 0x34b   :  { %2174 = vmatprep.subr.bf16.mxu0 %v2845_v36  ;;  %2206 = vmatprep.subr.bf16.mxu1 %v2847_v37 }
 0x34e   :  { %2176 = vmatpush1.bf16.msra.mxu0 %v2851_v41  ;;  %2208 = vmatpush1.bf16.msra.mxu1 %v2858_v45 }
 0x34f   :  { %2178 = vmatprep.subr.bf16.mxu0 %v2862_v49  ;;  %2210 = vmatprep.subr.bf16.mxu1 %v2866_v53 }
 0x352   :  { %2180 = vmatpush1.bf16.msra.mxu0 %v2870_v56  ;;  %2212 = vmatpush1.bf16.msra.mxu1 %v2874_v60 }
 0x353   :  { %2182 = vmatprep.subr.bf16.mxu0 %v2881_v1  ;;  %2214 = vmatprep.subr.bf16.mxu1 %v2885_v4 }
 0x356   :  { %2184 = vmatpush1.bf16.msra.mxu0 %v2889_v7  ;;  %2216 = vmatpush1.bf16.msra.mxu1 %v2893_v12 }
 0x357   :  { %2186 = vmatprep.subr.bf16.mxu0 %v2900_v17  ;;  %2218 = vmatprep.subr.bf16.mxu1 %v2904_v21 }
 0x35a   :  { %2188 = vmatpush1.bf16.msra.mxu0 %v2908_v26  ;;  %2220 = vmatpush1.bf16.msra.mxu1 %v2912_v30 }
 0x35b   :  { %2190 = vmatprep.subr.bf16.mxu0 %v2919_v35  ;;  %2222 = vmatprep.subr.bf16.mxu1 %v2923_v40 }
 0x35e   :  { %2192 = vmatpush1.bf16.msra.mxu0 %v2927_v44  ;;  %2224 = vmatpush1.bf16.msra.mxu1 %v2931_v48 }
 0x35f   :  { %2194 = vmatprep.subr.bf16.mxu0 %v2938_v54  ;;  %2226 = vmatprep.subr.bf16.mxu1 %v2942_v58 }
 0x362   :  { %2196 = vmatpush1.bf16.msra.mxu0 %v2946_v59  ;;  %2228 = vmatpush1.bf16.msra.mxu1 %v2950_v61 }
 0x363   :  { %2230 = vmatprep.subr.bf16.mxu0 %v2812_v10  ;;  %2262 = vmatprep.subr.bf16.mxu1 %v2814_v11 }
 0x418   :  { %v981_v38 = vpop.f32.mrb[6].mxu0  ;;  %v1052_v14 = vpop.f32.mrb[6].mxu1 }
 0x419   :  { %v2451_v18 = vadd.f32 %v981_v38, %v3000_v8  ;;  %v2467_v22 = vadd.f32 %v1052_v14, %v3002_v9  ;;  %v983_v25 = vpop.f32.mrb[7].mxu0  ;;  %v1054_v27 = vpop.f32.mrb[7].mxu1 }
 0x41a   :  { %v2452_v29 = vadd.f32 %v983_v25, %v3004_v13  ;;  %v2468_v39 = vadd.f32 %v1054_v27, %v3009_v31 }
 0x41b   :  { %2550 = vtanh.f32 %v2451_v18 }
 0x41c   :  { %2552 = vtanh.f32 %v2467_v22 }
 0x41d   :  { %2554 = vtanh.f32 %v2452_v29 }
 0x41e   :  { %2556 = vtanh.f32 %v2468_v39 }
 0x425   :  { %v2551_v46 = vpop.eup %2550 }
 0x426   :  { %v2553_v47 = vpop.eup %2552  ;;  %v1065_v51 = vmul.f32 %v2551_v46, %v3014_v33 }
 0x427   :  { %v2555_v52 = vpop.eup %2554  ;;  %v1067_v6 = vmul.f32 %v2553_v47, %v3019_v34 }
 0x428   :  { %v1069_v62 = vadd.f32 %v1065_v51, %v3022_v42  ;;  %v1066_v63 = vmul.f32 %v2555_v52, %v3027_v43  ;;  %v2557_v18 = vpop.eup %2556 }
 0x429   :  { %v1071_v2 = vadd.f32 %v1067_v6, %v3030_v50  ;;  %v1068_v22 = vmul.f32 %v2557_v18, %v3045_v16 }
 0x42a   :  { %v1070_v3 = vadd.f32 %v1066_v63, %v3033_v55 }
 0x42b   :  { %v1074_v5 = vmul.f32 %v1071_v2, %v1069_v62  ;;  %v1072_v25 = vadd.f32 %v1068_v22, %v3048_v20 }
 0x42c   :  { %v1073_v38 = vmul.f32 %v1070_v3, %v3146_v57 }
 0x42e   :  { %v3196_v14 = vadd.f32 %v1074_v5, %v1073_v38 }
 0x430   :  { %2558 = vtanh.f32 %v3196_v14 }
 0x43a   :  { %v2559_v27 = vpop.eup %2558 }
 0x43b   :  { %v1077_v29 = vmul.f32 %v2559_v27, %v1072_v25 }
 0x43d   :  { %1143 = vmatmul.mubr.f32.vlgmr.msra.gmra.mrb[8].mxu0 %v1077_v29  ;;  %1214 = vmatmul.mubr.f32.vlgmr.msra.gmra.mrb[8].mxu1 %v1077_v29 }
 0x43e   :  { %2232 = vmatpush1.bf16.msra.mxu0 %v2816_v15  ;;  %2264 = vmatpush1.bf16.msra.mxu1 %v2825_v19 }
 0x43f   :  { %2234 = vmatprep.subr.bf16.mxu0 %v2828_v23  ;;  %2266 = vmatprep.subr.bf16.mxu1 %v2830_v24 }
 0x440   :  { %1305 = vmatprep.mubr.f32.mxu0 %v2701_v0  ;;  %1376 = vmatprep.mubr.f32.mxu1 %v2701_v0 }
 0x442   :  { %2236 = vmatpush1.bf16.msra.mxu0 %v2834_v28  ;;  %2268 = vmatpush1.bf16.msra.mxu1 %v2841_v32 }
 0x443   :  { %2238 = vmatprep.subr.bf16.mxu0 %v2845_v36  ;;  %2270 = vmatprep.subr.bf16.mxu1 %v2847_v37 }
 0x446   :  { %2240 = vmatpush1.bf16.msra.mxu0 %v2851_v41  ;;  %2272 = vmatpush1.bf16.msra.mxu1 %v2858_v45 }
 0x447   :  { %2242 = vmatprep.subr.bf16.mxu0 %v2862_v49  ;;  %2274 = vmatprep.subr.bf16.mxu1 %v2866_v53 }
 0x44a   :  { %2244 = vmatpush1.bf16.msra.mxu0 %v2870_v56  ;;  %2276 = vmatpush1.bf16.msra.mxu1 %v2874_v60 }
 0x44b   :  { %2246 = vmatprep.subr.bf16.mxu0 %v2881_v1  ;;  %2278 = vmatprep.subr.bf16.mxu1 %v2885_v4 }
 0x44e   :  { %2248 = vmatpush1.bf16.msra.mxu0 %v2889_v7  ;;  %2280 = vmatpush1.bf16.msra.mxu1 %v2893_v12 }
 0x44f   :  { %2250 = vmatprep.subr.bf16.mxu0 %v2900_v17  ;;  %2282 = vmatprep.subr.bf16.mxu1 %v2904_v21 }
 0x452   :  { %2252 = vmatpush1.bf16.msra.mxu0 %v2908_v26  ;;  %2284 = vmatpush1.bf16.msra.mxu1 %v2912_v30 }
 0x453   :  { %2254 = vmatprep.subr.bf16.mxu0 %v2919_v35  ;;  %2286 = vmatprep.subr.bf16.mxu1 %v2923_v40 }
 0x456   :  { %2256 = vmatpush1.bf16.msra.mxu0 %v2927_v44  ;;  %2288 = vmatpush1.bf16.msra.mxu1 %v2931_v48 }
 0x457   :  { %2258 = vmatprep.subr.bf16.mxu0 %v2938_v54  ;;  %2290 = vmatprep.subr.bf16.mxu1 %v2942_v58 }
 0x45a   :  { %2260 = vmatpush1.bf16.msra.mxu0 %v2946_v59  ;;  %2292 = vmatpush1.bf16.msra.mxu1 %v2950_v61 }
 0x45b   :  { %2294 = vmatprep.subr.bf16.mxu0 %v2812_v10  ;;  %2326 = vmatprep.subr.bf16.mxu1 %v2814_v11 }
 0x510   :  { %v1144_v57 = vpop.f32.mrb[8].mxu0  ;;  %v1215_v39 = vpop.f32.mrb[8].mxu1 }
 0x511   :  { %v2453_v46 = vadd.f32 %v1144_v57, %v3000_v8  ;;  %v2469_v47 = vadd.f32 %v1215_v39, %v3002_v9  ;;  %v1146_v51 = vpop.f32.mrb[9].mxu0  ;;  %v1217_v52 = vpop.f32.mrb[9].mxu1 }
 0x512   :  { %v2454_v6 = vadd.f32 %v1146_v51, %v3004_v13  ;;  %v2470_v62 = vadd.f32 %v1217_v52, %v3009_v31 }
 0x513   :  { %2560 = vtanh.f32 %v2453_v46 }
 0x514   :  { %2562 = vtanh.f32 %v2469_v47 }
 0x515   :  { %2564 = vtanh.f32 %v2454_v6 }
 0x516   :  { %2566 = vtanh.f32 %v2470_v62 }
 0x51d   :  { %v2561_v63 = vpop.eup %2560 }
 0x51e   :  { %v2563_v2 = vpop.eup %2562  ;;  %v1228_v3 = vmul.f32 %v2561_v63, %v3014_v33 }
 0x51f   :  { %v2565_v5 = vpop.eup %2564  ;;  %v1230_v38 = vmul.f32 %v2563_v2, %v3019_v34 }
 0x520   :  { %v1232_v18 = vadd.f32 %v1228_v3, %v3022_v42  ;;  %v1229_v22 = vmul.f32 %v2565_v5, %v3027_v43  ;;  %v2567_v46 = vpop.eup %2566 }
 0x521   :  { %v1234_v25 = vadd.f32 %v1230_v38, %v3030_v50  ;;  %v1231_v47 = vmul.f32 %v2567_v46, %v3045_v16 }
 0x522   :  { %v1233_v27 = vadd.f32 %v1229_v22, %v3033_v55 }
 0x523   :  { %v1237_v29 = vmul.f32 %v1234_v25, %v1232_v18  ;;  %v1235_v51 = vadd.f32 %v1231_v47, %v3048_v20 }
 0x524   :  { %v1236_v57 = vmul.f32 %v1233_v27, %v3196_v14 }
 0x526   :  { %v3246_v39 = vadd.f32 %v1237_v29, %v1236_v57 }
 0x528   :  { %2568 = vtanh.f32 %v3246_v39 }
 0x532   :  { %v2569_v52 = vpop.eup %2568 }
 0x533   :  { %v1240_v6 = vmul.f32 %v2569_v52, %v1235_v51 }
 0x535   :  { %1306 = vmatmul.mubr.f32.vlgmr.msra.gmra.mrb[10].mxu0 %v1240_v6  ;;  %1377 = vmatmul.mubr.f32.vlgmr.msra.gmra.mrb[10].mxu1 %v1240_v6 }
 0x536   :  { %2296 = vmatpush1.bf16.msra.mxu0 %v2816_v15  ;;  %2328 = vmatpush1.bf16.msra.mxu1 %v2825_v19 }
 0x537   :  { %2298 = vmatprep.subr.bf16.mxu0 %v2828_v23  ;;  %2330 = vmatprep.subr.bf16.mxu1 %v2830_v24 }
 0x538   :  { %1468 = vmatprep.mubr.f32.mxu0 %v2701_v0  ;;  %1539 = vmatprep.mubr.f32.mxu1 %v2701_v0 }
 0x53a   :  { %2300 = vmatpush1.bf16.msra.mxu0 %v2834_v28  ;;  %2332 = vmatpush1.bf16.msra.mxu1 %v2841_v32 }
 0x53b   :  { %2302 = vmatprep.subr.bf16.mxu0 %v2845_v36  ;;  %2334 = vmatprep.subr.bf16.mxu1 %v2847_v37 }
 0x53e   :  { %2304 = vmatpush1.bf16.msra.mxu0 %v2851_v41  ;;  %2336 = vmatpush1.bf16.msra.mxu1 %v2858_v45 }
 0x53f   :  { %2306 = vmatprep.subr.bf16.mxu0 %v2862_v49  ;;  %2338 = vmatprep.subr.bf16.mxu1 %v2866_v53 }
 0x542   :  { %2308 = vmatpush1.bf16.msra.mxu0 %v2870_v56  ;;  %2340 = vmatpush1.bf16.msra.mxu1 %v2874_v60 }
 0x543   :  { %2310 = vmatprep.subr.bf16.mxu0 %v2881_v1  ;;  %2342 = vmatprep.subr.bf16.mxu1 %v2885_v4 }
 0x546   :  { %2312 = vmatpush1.bf16.msra.mxu0 %v2889_v7  ;;  %2344 = vmatpush1.bf16.msra.mxu1 %v2893_v12 }
 0x547   :  { %2314 = vmatprep.subr.bf16.mxu0 %v2900_v17  ;;  %2346 = vmatprep.subr.bf16.mxu1 %v2904_v21 }
 0x54a   :  { %2316 = vmatpush1.bf16.msra.mxu0 %v2908_v26  ;;  %2348 = vmatpush1.bf16.msra.mxu1 %v2912_v30 }
 0x54b   :  { %2318 = vmatprep.subr.bf16.mxu0 %v2919_v35  ;;  %2350 = vmatprep.subr.bf16.mxu1 %v2923_v40 }
 0x54e   :  { %2320 = vmatpush1.bf16.msra.mxu0 %v2927_v44  ;;  %2352 = vmatpush1.bf16.msra.mxu1 %v2931_v48 }
 0x54f   :  { %2322 = vmatprep.subr.bf16.mxu0 %v2938_v54  ;;  %2354 = vmatprep.subr.bf16.mxu1 %v2942_v58 }
 0x552   :  { %2324 = vmatpush1.bf16.msra.mxu0 %v2946_v59  ;;  %2356 = vmatpush1.bf16.msra.mxu1 %v2950_v61 }
 0x553   :  { %2358 = vmatprep.subr.bf16.mxu0 %v2812_v10  ;;  %2390 = vmatprep.subr.bf16.mxu1 %v2814_v11 }
 0x608   :  { %v1307_v14 = vpop.f32.mrb[10].mxu0  ;;  %v1378_v62 = vpop.f32.mrb[10].mxu1 }
 0x609   :  { %v2455_v63 = vadd.f32 %v1307_v14, %v3000_v8  ;;  %v2471_v2 = vadd.f32 %v1378_v62, %v3002_v9  ;;  %v1309_v3 = vpop.f32.mrb[11].mxu0  ;;  %v1380_v5 = vpop.f32.mrb[11].mxu1 }
 0x60a   :  { %v2456_v38 = vadd.f32 %v1309_v3, %v3004_v13  ;;  %v2472_v18 = vadd.f32 %v1380_v5, %v3009_v31 }
 0x60b   :  { %2570 = vtanh.f32 %v2455_v63 }
 0x60c   :  { %2572 = vtanh.f32 %v2471_v2 }
 0x60d   :  { %2574 = vtanh.f32 %v2456_v38  ;;  %v1734_v38 = vld [vmem:[#allocation7 + $0x20] sm:$0xff] }
 0x60e   :  { %2576 = vtanh.f32 %v2472_v18  ;;  %v1735_v18 = vld [vmem:[#allocation7 + $0x28] sm:$0xff] }
 0x615   :  { %v2571_v22 = vpop.eup %2570 }
 0x616   :  { %v2573_v25 = vpop.eup %2572  ;;  %v1391_v10 = vmul.f32 %v2571_v22, %v3014_v33  ;;  %v2428_v22 = vpack.c.bf16 %v1735_v18, %v1734_v38 }
 0x617   :  { %v2575_v11 = vpop.eup %2574  ;;  %v1393_v27 = vmul.f32 %v2573_v25, %v3019_v34  ;;  %v1736_v25 = vld [vmem:[#allocation7 + $0x30] sm:$0xff] }
 0x618   :  { %v1395_v29 = vadd.f32 %v1391_v10, %v3022_v42  ;;  %v1392_v57 = vmul.f32 %v2575_v11, %v3027_v43  ;;  %v2577_v14 = vpop.eup %2576  ;;  %v1737_v10 = vld [vmem:[#allocation7 + $0x38] sm:$0xff] }
 0x619   :  { %v1397_v46 = vadd.f32 %v1393_v27, %v3030_v50  ;;  %v1394_v62 = vmul.f32 %v2577_v14, %v3045_v16  ;;  %v2431_v11 = vpack.c.bf16 %v1737_v10, %v1736_v25  ;;  %v1738_v27 = vld [vmem:[#allocation7 + $0x40] sm:$0xff] }
 0x61a   :  { %v1396_v47 = vadd.f32 %v1392_v57, %v3033_v55 }
 0x61b   :  { %v1400_v51 = vmul.f32 %v1397_v46, %v1395_v29  ;;  %v1398_v63 = vadd.f32 %v1394_v62, %v3048_v20  ;;  %v1739_v29 = vld [vmem:[#allocation7 + $0x48] sm:$0xff]  ;;  %v1740_v46 = vld [vmem:[#allocation7 + $0x50] sm:$0xff] }
 0x61c   :  { %v1399_v52 = vmul.f32 %v1396_v47, %v3246_v39  ;;  %v1733_v39 = vld [vmem:[#allocation7 + $0x18] sm:$0xff]  ;;  %v2434_v57 = vpack.c.bf16 %v1739_v29, %v1738_v27  ;;  %v1744_v62 = vld [vmem:[#allocation7 + $0x70] sm:$0xff] }
 0x61d   :  { %v1741_v47 = vld [vmem:[#allocation7 + $0x58] sm:$0xff] }
 0x61e   :  { %v3296_v6 = vadd.f32 %v1400_v51, %v1399_v52  ;;  %v2437_v51 = vpack.c.bf16 %v1741_v47, %v1740_v46  ;;  %v1742_v52 = vld [vmem:[#allocation7 + $0x60] sm:$0xff] }
 0x620   :  { %2578 = vtanh.f32 %v3296_v6 }
 0x62a   :  { %v2579_v2 = vpop.eup %2578 }
 0x62b   :  { %v1403_v3 = vmul.f32 %v2579_v2, %v1398_v63  ;;  %v1745_v63 = vld [vmem:[#allocation7 + $0x78] sm:$0xff] }
 0x62c   :  { %v2443_v2 = vpack.c.bf16 %v1745_v63, %v1744_v62 }
 0x62d   :  { %1469 = vmatmul.mubr.f32.vlgmr.msra.gmra.mrb[12].mxu0 %v1403_v3  ;;  %1540 = vmatmul.mubr.f32.vlgmr.msra.gmra.mrb[12].mxu1 %v1403_v3 }
 0x62e   :  { %2360 = vmatpush1.bf16.msra.mxu0 %v2816_v15  ;;  %2392 = vmatpush1.bf16.msra.mxu1 %v2825_v19 }
 0x62f   :  { %2362 = vmatprep.subr.bf16.mxu0 %v2828_v23  ;;  %2394 = vmatprep.subr.bf16.mxu1 %v2830_v24 }
 0x630   :  { %1631 = vmatprep.mubr.f32.mxu0 %v2701_v0  ;;  %1702 = vmatprep.mubr.f32.mxu1 %v2701_v0 }
 0x632   :  { %2364 = vmatpush1.bf16.msra.mxu0 %v2834_v28  ;;  %2396 = vmatpush1.bf16.msra.mxu1 %v2841_v32 }
 0x633   :  { %2366 = vmatprep.subr.bf16.mxu0 %v2845_v36  ;;  %2398 = vmatprep.subr.bf16.mxu1 %v2847_v37 }
 0x636   :  { %2368 = vmatpush1.bf16.msra.mxu0 %v2851_v41  ;;  %2400 = vmatpush1.bf16.msra.mxu1 %v2858_v45 }
 0x637   :  { %2370 = vmatprep.subr.bf16.mxu0 %v2862_v49  ;;  %2402 = vmatprep.subr.bf16.mxu1 %v2866_v53 }
 0x63a   :  { %2372 = vmatpush1.bf16.msra.mxu0 %v2870_v56  ;;  %2404 = vmatpush1.bf16.msra.mxu1 %v2874_v60 }
 0x63b   :  { %2374 = vmatprep.subr.bf16.mxu0 %v2881_v1  ;;  %2406 = vmatprep.subr.bf16.mxu1 %v2885_v4 }
 0x63e   :  { %2376 = vmatpush1.bf16.msra.mxu0 %v2889_v7  ;;  %2408 = vmatpush1.bf16.msra.mxu1 %v2893_v12 }
 0x63f   :  { %2378 = vmatprep.subr.bf16.mxu0 %v2900_v17  ;;  %2410 = vmatprep.subr.bf16.mxu1 %v2904_v21 }
 0x642   :  { %2380 = vmatpush1.bf16.msra.mxu0 %v2908_v26  ;;  %2412 = vmatpush1.bf16.msra.mxu1 %v2912_v30 }
 0x643   :  { %2382 = vmatprep.subr.bf16.mxu0 %v2919_v35  ;;  %2414 = vmatprep.subr.bf16.mxu1 %v2923_v40 }
 0x646   :  { %2384 = vmatpush1.bf16.msra.mxu0 %v2927_v44  ;;  %2416 = vmatpush1.bf16.msra.mxu1 %v2931_v48  ;;  %v1730_v48 = vld [vmem:[#allocation7] sm:$0xff] }
 0x647   :  { %2386 = vmatprep.subr.bf16.mxu0 %v2938_v54  ;;  %2418 = vmatprep.subr.bf16.mxu1 %v2942_v58  ;;  %v1731_v54 = vld [vmem:[#allocation7 + $0x8] sm:$0xff] }
 0x648   :  { %v2422_v58 = vpack.c.bf16 %v1731_v54, %v1730_v48 }
 0x64a   :  { %2388 = vmatpush1.bf16.msra.mxu0 %v2946_v59  ;;  %2420 = vmatpush1.bf16.msra.mxu1 %v2950_v61  ;;  %v2702_v59 = vmov 0.0|0.0   ;;  %v1732_v61 = vld [vmem:[#allocation7 + $0x10] sm:$0xff] }
 0x64b   :  { %2421 = vmatprep.subr.bf16.mxu0 %v2702_v59  ;;  %v2425_v5 = vpack.c.bf16 %v1733_v39, %v1732_v61 }
 0x700   :  { %v1470_v15 = vpop.f32.mrb[12].mxu0  ;;  %v1541_v19 = vpop.f32.mrb[12].mxu1 }
 0x701   :  { %v2457_v23 = vadd.f32 %v1470_v15, %v3000_v8  ;;  %v2473_v24 = vadd.f32 %v1541_v19, %v3002_v9  ;;  %v1472_v28 = vpop.f32.mrb[13].mxu0  ;;  %v1543_v32 = vpop.f32.mrb[13].mxu1 }
 0x702   :  { %v2458_v36 = vadd.f32 %v1472_v28, %v3004_v13  ;;  %v2474_v37 = vadd.f32 %v1543_v32, %v3009_v31 }
 0x703   :  { %2580 = vtanh.f32 %v2457_v23 }
 0x704   :  { %2582 = vtanh.f32 %v2473_v24 }
 0x705   :  { %2584 = vtanh.f32 %v2458_v36 }
 0x706   :  { %2586 = vtanh.f32 %v2474_v37 }
 0x70d   :  { %v2581_v41 = vpop.eup %2580 }
 0x70e   :  { %v2583_v45 = vpop.eup %2582  ;;  %v1554_v49 = vmul.f32 %v2581_v41, %v3014_v33 }
 0x70f   :  { %v2585_v53 = vpop.eup %2584  ;;  %v1556_v56 = vmul.f32 %v2583_v45, %v3019_v34 }
 0x710   :  { %v1558_v60 = vadd.f32 %v1554_v49, %v3022_v42  ;;  %v1555_v1 = vmul.f32 %v2585_v53, %v3027_v43  ;;  %v2587_v26 = vpop.eup %2586 }
 0x711   :  { %v1560_v4 = vadd.f32 %v1556_v56, %v3030_v50  ;;  %v1557_v30 = vmul.f32 %v2587_v26, %v3045_v16 }
 0x712   :  { %v1559_v7 = vadd.f32 %v1555_v1, %v3033_v55 }
 0x713   :  { %v1563_v12 = vmul.f32 %v1560_v4, %v1558_v60  ;;  %v1561_v35 = vadd.f32 %v1557_v30, %v3048_v20 }
 0x714   :  { %v1562_v17 = vmul.f32 %v1559_v7, %v3296_v6  ;;  %v1743_v6 = vld [vmem:[#allocation7 + $0x68] sm:$0xff] }
 0x715   :  { %v2440_v14 = vpack.c.bf16 %v1743_v6, %v1742_v52 }
 0x716   :  { %v3344_v21 = vadd.f32 %v1563_v12, %v1562_v17 }
 0x718   :  { %2588 = vtanh.f32 %v3344_v21 }
 0x722   :  { %v2589_v40 = vpop.eup %2588 }
 0x723   :  { %v1566_v44 = vmul.f32 %v2589_v40, %v1561_v35 }
 0x725   :  { %1632 = vmatmul.mubr.f32.vlgmr.msra.gmra.mrb[14].mxu0 %v1566_v44  ;;  %1703 = vmatmul.mubr.f32.vlgmr.msra.gmra.mrb[14].mxu1 %v1566_v44 }
 0x726   :  { %2423 = vmatpush3.bf16.msra.mxu0 %v2422_v58  ;;  %1906 = vmatprep.mubr.msk.f32.mxu0 %vm2703_vm1, %v2701_v0 }
 0x727   :  { %2424 = vmatprep.subr.bf16.mxu0 %v2702_v59 }
 0x72a   :  { %2426 = vmatpush3.bf16.msra.mxu0 %v2425_v5 }
 0x72b   :  { %2427 = vmatprep.subr.bf16.mxu0 %v2702_v59 }
 0x72e   :  { %2429 = vmatpush3.bf16.msra.mxu0 %v2428_v22 }
 0x72f   :  { %2430 = vmatprep.subr.bf16.mxu0 %v2702_v59 }
 0x732   :  { %2432 = vmatpush3.bf16.msra.mxu0 %v2431_v11 }
 0x733   :  { %2433 = vmatprep.subr.bf16.mxu0 %v2702_v59 }
 0x736   :  { %2435 = vmatpush3.bf16.msra.mxu0 %v2434_v57 }
 0x737   :  { %2436 = vmatprep.subr.bf16.mxu0 %v2702_v59 }
 0x73a   :  { %2438 = vmatpush3.bf16.msra.mxu0 %v2437_v51 }
 0x73b   :  { %2439 = vmatprep.subr.bf16.mxu0 %v2702_v59 }
 0x73e   :  { %2441 = vmatpush3.bf16.msra.mxu0 %v2440_v14 }
 0x73f   :  { %2442 = vmatprep.subr.bf16.mxu0 %v2702_v59 }
 0x742   :  { %2444 = vmatpush3.bf16.msra.mxu0 %v2443_v2 }
 0x7f8   :  { %v1633_v3 = vpop.f32.mrb[14].mxu0  ;;  %v1704_v15 = vpop.f32.mrb[14].mxu1 }
 0x7f9   :  { %v2459_v19 = vadd.f32 %v1633_v3, %v3000_v8  ;;  %v2475_v23 = vadd.f32 %v1704_v15, %v3002_v9  ;;  %v1635_v24 = vpop.f32.mrb[15].mxu0  ;;  %v1706_v0 = vpop.f32.mrb[15].mxu1 }
 0x7fa   :  { %v2460_v28 = vadd.f32 %v1635_v24, %v3004_v13  ;;  %v2476_v32 = vadd.f32 %v1706_v0, %v3009_v31 }
 0x7fb   :  { %2590 = vtanh.f32 %v2459_v19 }
 0x7fc   :  { %2592 = vtanh.f32 %v2475_v23 }
 0x7fd   :  { %2594 = vtanh.f32 %v2460_v28 }
 0x7fe   :  { %2596 = vtanh.f32 %v2476_v32 }
 0x805   :  { %v2591_v36 = vpop.eup %2590 }
 0x806   :  { %v2593_v37 = vpop.eup %2592  ;;  %v1717_v41 = vmul.f32 %v2591_v36, %v3014_v33 }
 0x807   :  { %v2595_v45 = vpop.eup %2594  ;;  %v1719_v49 = vmul.f32 %v2593_v37, %v3019_v34 }
 0x808   :  { %v1721_v8 = vadd.f32 %v1717_v41, %v3022_v42  ;;  %v1718_v9 = vmul.f32 %v2595_v45, %v3027_v43  ;;  %v2597_v1 = vpop.eup %2596  ;;  %v1856_v42 = vld [vmem:[%s3385_s7] ss:$0 sm:$0xff] }
 0x809   :  { %v1723_v53 = vadd.f32 %v1719_v49, %v3030_v50  ;;  %v1720_v33 = vmul.f32 %v2597_v1, %v3045_v16 }
 0x80a   :  { %v1722_v13 = vadd.f32 %v1718_v9, %v3033_v55 }
 0x80b   :  { %v1726_v56 = vmul.f32 %v1723_v53, %v1721_v8  ;;  %v1724_v4 = vadd.f32 %v1720_v33, %v3048_v20 }
 0x80c   :  { %v1725_v60 = vmul.f32 %v1722_v13, %v3344_v21 }
 0x80e   :  { %v1727_v31 = vadd.f32 %v1726_v56, %v1725_v60 }
 0x810   :  { %2598 = vtanh.f32 %v1727_v31 }
 0x81a   :  { %v2599_v34 = vpop.eup %2598 }
 0x81b   :  { %v1729_v7 = vmul.f32 %v2599_v34, %v1724_v4 }
 0x81d   :  { %1907 = vmatmul.mubr.f32.vlgmr.msra.gmra.mrb[16].mxu0 %v1729_v7 }
 0x8f0   :  { %v1819_v43 = vpop.f32.mrb[16].mxu0 }
 0x8f1   :  { %v1820_v50 = vadd.f32 %v1856_v42, %v1819_v43  ;;  %v1908_v55 = vpop.f32.mrb[17].mxu0 }
 0x8f3   :  { %1823 = vst [vmem:[#allocation8] sm:$0xff] %v1820_v50 }
 0x8f4   :  { %2677 = shalt.err (!%p2674_p0)
}
 0x8f5   :  { %s2678_s9 = scalar_lea.hbm %s3386_s8, 128 }
 0x8f6   :  { %p2679_p1 = scmp.ne.s32.totalorder %s3386_s8, %s2678_s9  ;;  %p2682_p2 = scmp.lt.u32.totalorder %s2678_s9, %s3386_s8 }
 0x8f8   :  { %p2684_p3 = pnand %p2682_p2, %p2679_p1 }
 0x8fa   :  { %2687 = shalt.err (!%p2684_p3)
}
 0x8fb   :  { %1833 = dma.vmem_to_hbm [thread:$0]  %s1831_s27, 128, %s3386_s8, [#allocation4]  }
 0x8fc   :  { %2692 = dma.done.wait [#allocation4], 128  }
 0x8fd   :  { %2693 = vsyncadd [#allocation4], 4294967168 }
 0x8fe   :  { %1837 = vsyncpa [#allocation3], 1 }
 0x8ff   :  { %1838 = vsyncpa [#allocation6], 1 }
 0x900   :  { %1839 = vsyncpa [#allocation4], 1 }

</bundles_post_ra>
